<compile_context>
chip_gen: v5e
topology: v5e:2x2
jax: 0.10.0
libtpu: 0.0.40
codegen_flags: <defaults>
</compile_context>

<pallas_src>
import functools

import jax
import jax.numpy as jnp
from jax.experimental import pallas as pl
from jax.experimental.pallas import tpu as pltpu

_SQRT1_2 = 0.7071067811865476


def _erf(z):
    # Abramowitz & Stegun 7.1.26 rational approximation (|err| < 1.5e-7).
    # TODO(synk): switch to lax.erf once its Mosaic lowering is confirmed; the
    # tanh-approx GELU would diverge from nn.GELU() (erf form) by ~1e-3.
    p = 0.3275911
    a1, a2, a3, a4, a5 = 0.254829592, -0.284496736, 1.421413741, -1.453152027, 1.061405429
    az = jnp.abs(z)
    t = 1.0 / (1.0 + p * az)
    poly = ((((a5 * t + a4) * t + a3) * t + a2) * t + a1) * t
    y = 1.0 - poly * jnp.exp(-az * az)
    return jnp.where(z >= 0, y, -y)


def _gelu(x):
    # nn.GELU() default = exact (erf-based) GELU.
    return 0.5 * x * (1.0 + _erf(x * _SQRT1_2))


def _ln_gelu(v, sel, g, b, rows_per_sample, eps=1e-5):
    """Fused per-sample LayerNorm (over rows_per_sample rows x all lanes) + GELU.

    One pass computes sum and sum-of-squares (var = E[x^2] - E[x]^2); the
    cross-row reduce+broadcast is an MXU matmul with `sel` (block-diag ones),
    keeping the two XLU units off the critical path.
    """
    inv_n = 1.0 / float(rows_per_sample * v.shape[-1])
    s = jnp.sum(jnp.dot(sel, v, preferred_element_type=jnp.float32),
                axis=-1, keepdims=True)
    ss = jnp.sum(jnp.dot(sel, v * v, preferred_element_type=jnp.float32),
                 axis=-1, keepdims=True)
    mu = s * inv_n
    var = ss * inv_n - mu * mu
    xhat = (v - mu) * jax.lax.rsqrt(var + eps)
    return _gelu(xhat * g + b)


def convffn_kernel(x_ref, w1_ref, b1_ref, g1_ref, be1_ref,
                   ddw_ref, bdw_ref, shh_ref, sel_ref,
                   g2_ref, be2_ref, w2_ref, b2_ref, g3_ref, be3_ref,
                   o_ref, *, rows_per_sample):
    f32 = jnp.float32
    sel = sel_ref[...]                       # (R, R) per-sample reduce+broadcast
    x = x_ref[...]                           # (R, W*C)  rows=(sample,h), lanes=(w,c)

    # ---- fc1: 1x1 conv == one lane-packed MXU matmul (block-diag weight) ----
    h = jnp.dot(x, w1_ref[...], preferred_element_type=f32) + b1_ref[...]

    # ---- norm1 + act1 ----
    h = _ln_gelu(h, sel, g1_ref[...], be1_ref[...], rows_per_sample)

    # ---- dw3x3: depthwise 3x3, stride 1, padding 1 ----
    # W/dx taps: banded lane-matrices (one per dy); H/dy taps: 0/1 row-shift
    # matrices (dy=1 is the identity).  Exact zero padding, fully aligned,
    # no VMEM scratch, no unaligned tile-crossing slices.
    p0 = jnp.dot(h, ddw_ref[0], preferred_element_type=f32)
    p1 = jnp.dot(h, ddw_ref[1], preferred_element_type=f32)
    p2 = jnp.dot(h, ddw_ref[2], preferred_element_type=f32)
    h = (jnp.dot(shh_ref[0], p0, preferred_element_type=f32)
         + p1
         + jnp.dot(shh_ref[1], p2, preferred_element_type=f32)
         + bdw_ref[...])

    # ---- norm2 + act2 (dropout p=0 -> identity) ----
    h = _ln_gelu(h, sel, g2_ref[...], be2_ref[...], rows_per_sample)

    # ---- fc2: 1x1 conv ----
    h = jnp.dot(h, w2_ref[...], preferred_element_type=f32) + b2_ref[...]

    # ---- norm3 + act3 ----
    h = _ln_gelu(h, sel, g3_ref[...], be3_ref[...], rows_per_sample)

    o_ref[...] = h.astype(o_ref.dtype)


def _pick_block_samples(B, H):
    """Samples per grid block: smallest divisor of B giving >= 256 rows
    (fills MXU rows / amortizes per-step overhead); otherwise the whole batch
    in one step (a full-array block is always layout-legal)."""
    for d in range(1, B):
        if B % d == 0 and (d * H) % 8 == 0 and d * H >= 256:
            return d
    return B


def conv_ffn_forward(x, params):
    """x: (N, T, H, W, C) float32. `params` use PyTorch Conv2d/LayerNorm layouts:
       fc1_w (Ch,C,1,1), fc1_b (Ch,), norm*_g/b (Cx,H,W), dw_w (Ch,1,3,3),
       dw_b (Ch,), fc2_w (Co,Ch,1,1), fc2_b (Co,).  Returns (N,T,H,W,Co)."""
    (fc1_w, fc1_b, g1, be1, dw_w, dw_b, g2, be2, fc2_w, fc2_b, g3, be3) = params
    N, T, H, W, C = x.shape
    Ch = fc1_w.shape[0]
    Co = fc2_w.shape[0]
    B = N * T
    Bt = _pick_block_samples(B, H)       # samples per grid block
    G = B // Bt                          # grid length
    R = Bt * H                           # rows per block
    Lc, Lh, Lo = W * C, W * Ch, W * Co   # lane widths per stage

    f32 = jnp.float32
    eyeW = jnp.eye(W, dtype=f32)
    eyeBt = jnp.eye(Bt, dtype=f32)

    # ---- lane-packed parameters (lane index = w*Cx + c) ----
    w1p = jnp.kron(eyeW, fc1_w[:, :, 0, 0].T.astype(f32))          # (Lc, Lh)
    b1p = jnp.tile(fc1_b.astype(f32), W)[None, :]                  # (1, Lh)
    w2p = jnp.kron(eyeW, fc2_w[:, :, 0, 0].T.astype(f32))          # (Lh, Lo)
    b2p = jnp.tile(fc2_b.astype(f32), W)[None, :]                  # (1, Lo)

    # depthwise: banded lane-matrix per dy (handles the dx taps + W zero-pad)
    ddw = jnp.stack([
        sum(jnp.kron(jnp.eye(W, k=1 - dx, dtype=f32),
                     jnp.diag(dw_w[:, 0, dy, dx].astype(f32)))
            for dx in range(3))
        for dy in range(3)])                                       # (3, Lh, Lh)
    bdwp = jnp.tile(dw_b.astype(f32), W)[None, :]                  # (1, Lh)

    # row-shift matrices for dy=0 / dy=2 (dy=1 is identity); block-diag over
    # samples so rows never leak across sample boundaries (== zero padding in H)
    shh = jnp.stack([jnp.kron(eyeBt, jnp.eye(H, k=-1, dtype=f32)),
                     jnp.kron(eyeBt, jnp.eye(H, k=+1, dtype=f32))])  # (2, R, R)

    # per-sample reduce+broadcast matrix for the LayerNorms
    sel = jnp.kron(eyeBt, jnp.ones((H, H), f32))                   # (R, R)

    def pack_ln(p, Cx):  # (Cx, H, W) -> (R, W*Cx); rows repeat per sample
        q = jnp.transpose(p.astype(f32), (1, 2, 0)).reshape(H, W * Cx)
        return jnp.tile(q, (Bt, 1))

    g1p, be1p = pack_ln(g1, Ch), pack_ln(be1, Ch)
    g2p, be2p = pack_ln(g2, Ch), pack_ln(be2, Ch)
    g3p, be3p = pack_ln(g3, Co), pack_ln(be3, Co)

    # (N,T,H,W,C) -> (B*H, W*C): pure row-major reshape, no transpose.
    xp = x.reshape(B * H, Lc).astype(f32)

    def const_spec(a):
        nd = a.ndim
        return pl.BlockSpec(a.shape, lambda i, _nd=nd: (0,) * _nd)

    # VMEM use (blocks + params, double-buffered) is well under 1 MiB, so this
    # also fits v7x's 64 MiB physical / 32 MiB default scoped budget.
    # TODO(synk): mark the grid-invariant weight blocks single-buffered
    # (pipeline_mode=pl.Buffered(1)) once single-buffer mode is confirmed.
    grid_spec = pltpu.PrefetchScalarGridSpec(
        num_scalar_prefetch=0,
        grid=(G,),
        in_specs=[
            pl.BlockSpec((R, Lc), lambda i: (i, 0)),
            const_spec(w1p), const_spec(b1p), const_spec(g1p), const_spec(be1p),
            const_spec(ddw), const_spec(bdwp), const_spec(shh), const_spec(sel),
            const_spec(g2p), const_spec(be2p),
            const_spec(w2p), const_spec(b2p), const_spec(g3p), const_spec(be3p),
        ],
        out_specs=pl.BlockSpec((R, Lo), lambda i: (i, 0)),
    )

    out = pl.pallas_call(
        functools.partial(convffn_kernel, rows_per_sample=H),
        out_shape=jax.ShapeDtypeStruct((B * H, Lo), f32),
        grid_spec=grid_spec,
        compiler_params=pltpu.CompilerParams(
            dimension_semantics=("parallel",),
            vmem_limit_bytes=32 * 1024 * 1024),
    )(xp, w1p, b1p, g1p, be1p, ddw, bdwp, shh, sel,
      g2p, be2p, w2p, b2p, g3p, be3p)

    return out.reshape(N, T, H, W, Co)


def _reference_forward(x, params):
    """Pure-JAX reference mirroring the PyTorch forward (NCHW), for validation."""
    (fc1_w, fc1_b, g1, be1, dw_w, dw_b, g2, be2, fc2_w, fc2_b, g3, be3) = params
    N, T, H, W, C = x.shape
    Co = fc2_w.shape[0]
    hi = jax.lax.Precision.HIGHEST

    def ln(v, g, b, eps=1e-5):
        mu = jnp.mean(v, axis=(1, 2, 3), keepdims=True)
        var = jnp.mean((v - mu) ** 2, axis=(1, 2, 3), keepdims=True)
        return (v - mu) * jax.lax.rsqrt(var + eps) * g[None] + b[None]

    v = x.reshape(N * T, H, W, C).transpose(0, 3, 1, 2)              # NCHW
    v = jnp.einsum('bchw,oc->bohw', v, fc1_w[:, :, 0, 0], precision=hi) \
        + fc1_b[None, :, None, None]
    v = _gelu(ln(v, g1, be1))
    vp = jnp.pad(v, ((0, 0), (0, 0), (1, 1), (1, 1)))
    acc = sum(vp[:, :, dy:dy + H, dx:dx + W]
              * dw_w[:, 0, dy, dx][None, :, None, None]
              for dy in range(3) for dx in range(3))
    v = _gelu(ln(acc + dw_b[None, :, None, None], g2, be2))
    v = jnp.einsum('bchw,oc->bohw', v, fc2_w[:, :, 0, 0], precision=hi) \
        + fc2_b[None, :, None, None]
    v = _gelu(ln(v, g3, be3))
    return v.transpose(0, 2, 3, 1).reshape(N, T, H, W, Co)


if __name__ == "__main__":
    # ConvFFN(encH=8, encW=8, in_features=4, hidden_features=8, out_features=4)
    N, T, H, W, C = 2, 2, 8, 8, 4
    Ch, Co = 8, 4

    keys = jax.random.split(jax.random.PRNGKey(0), 13)
    x = jax.random.normal(keys[0], (N, T, H, W, C), jnp.float32)

    fc1_w = 0.2 * jax.random.normal(keys[1], (Ch, C, 1, 1), jnp.float32)
    fc1_b = 0.05 * jax.random.normal(keys[2], (Ch,), jnp.float32)
    g1 = 1.0 + 0.1 * jax.random.normal(keys[3], (Ch, H, W), jnp.float32)
    be1 = 0.05 * jax.random.normal(keys[4], (Ch, H, W), jnp.float32)
    dw_w = 0.2 * jax.random.normal(keys[5], (Ch, 1, 3, 3), jnp.float32)
    dw_b = 0.05 * jax.random.normal(keys[6], (Ch,), jnp.float32)
    g2 = 1.0 + 0.1 * jax.random.normal(keys[7], (Ch, H, W), jnp.float32)
    be2 = 0.05 * jax.random.normal(keys[8], (Ch, H, W), jnp.float32)
    fc2_w = 0.2 * jax.random.normal(keys[9], (Co, Ch, 1, 1), jnp.float32)
    fc2_b = 0.05 * jax.random.normal(keys[10], (Co,), jnp.float32)
    g3 = 1.0 + 0.1 * jax.random.normal(keys[11], (Co, H, W), jnp.float32)
    be3 = 0.05 * jax.random.normal(keys[12], (Co, H, W), jnp.float32)

    params = (fc1_w, fc1_b, g1, be1, dw_w, dw_b, g2, be2, fc2_w, fc2_b, g3, be3)

    y = jax.jit(conv_ffn_forward)(x, params)
    y = jax.block_until_ready(y)
    assert y.shape == (N, T, H, W, Co) and y.dtype == jnp.float32

    # Structural correctness check against a pure-JAX reference.  Expected error
    # is ~1e-5; the loose bound only tolerates MXU f32 pass differences while
    # still catching any layout / tap-indexing bug (those produce O(1) errors).
    y_ref = _reference_forward(x, params)
    max_err = float(jnp.max(jnp.abs(y - y_ref)))
    assert max_err < 5e-2, f"kernel vs reference mismatch: max abs err = {max_err}"

    print("KERNEL_OK")
</pallas_src>

<mosaic_0001>
module attributes {stable_mosaic.version = 11 : i64} {
  func.func @convffn_kernel(%arg0: i32, %arg1: memref<32x32xf32, #tpu.memory_space<vmem>>, %arg2: memref<32x64xf32, #tpu.memory_space<vmem>>, %arg3: memref<1x64xf32, #tpu.memory_space<vmem>>, %arg4: memref<32x64xf32, #tpu.memory_space<vmem>>, %arg5: memref<32x64xf32, #tpu.memory_space<vmem>>, %arg6: memref<3x64x64xf32, #tpu.memory_space<vmem>>, %arg7: memref<1x64xf32, #tpu.memory_space<vmem>>, %arg8: memref<2x32x32xf32, #tpu.memory_space<vmem>>, %arg9: memref<32x32xf32, #tpu.memory_space<vmem>>, %arg10: memref<32x64xf32, #tpu.memory_space<vmem>>, %arg11: memref<32x64xf32, #tpu.memory_space<vmem>>, %arg12: memref<64x32xf32, #tpu.memory_space<vmem>>, %arg13: memref<1x32xf32, #tpu.memory_space<vmem>>, %arg14: memref<32x32xf32, #tpu.memory_space<vmem>>, %arg15: memref<32x32xf32, #tpu.memory_space<vmem>>, %arg16: memref<32x32xf32, #tpu.memory_space<vmem>>) attributes {dimension_semantics = [#tpu.dimension_semantics<parallel>], iteration_bounds = array<i64: 1>, scalar_prefetch = 0 : i64, scratch_operands = 0 : i64, tpu.core_type = #tpu.core_type<tc>, window_params = [{transform_indices = @transform_0, window_bounds = array<i64: 32, 32>}, {pipeline_mode = #tpu.pipeline_mode<synchronous>, transform_indices = @transform_1, window_bounds = array<i64: 32, 64>}, {pipeline_mode = #tpu.pipeline_mode<synchronous>, transform_indices = @transform_2, window_bounds = array<i64: 1, 64>}, {pipeline_mode = #tpu.pipeline_mode<synchronous>, transform_indices = @transform_3, window_bounds = array<i64: 32, 64>}, {pipeline_mode = #tpu.pipeline_mode<synchronous>, transform_indices = @transform_4, window_bounds = array<i64: 32, 64>}, {pipeline_mode = #tpu.pipeline_mode<synchronous>, transform_indices = @transform_5, window_bounds = array<i64: 3, 64, 64>}, {pipeline_mode = #tpu.pipeline_mode<synchronous>, transform_indices = @transform_6, window_bounds = array<i64: 1, 64>}, {pipeline_mode = #tpu.pipeline_mode<synchronous>, transform_indices = @transform_7, window_bounds = array<i64: 2, 32, 32>}, {pipeline_mode = #tpu.pipeline_mode<synchronous>, transform_indices = @transform_8, window_bounds = array<i64: 32, 32>}, {pipeline_mode = #tpu.pipeline_mode<synchronous>, transform_indices = @transform_9, window_bounds = array<i64: 32, 64>}, {pipeline_mode = #tpu.pipeline_mode<synchronous>, transform_indices = @transform_10, window_bounds = array<i64: 32, 64>}, {pipeline_mode = #tpu.pipeline_mode<synchronous>, transform_indices = @transform_11, window_bounds = array<i64: 64, 32>}, {pipeline_mode = #tpu.pipeline_mode<synchronous>, transform_indices = @transform_12, window_bounds = array<i64: 1, 32>}, {pipeline_mode = #tpu.pipeline_mode<synchronous>, transform_indices = @transform_13, window_bounds = array<i64: 32, 32>}, {pipeline_mode = #tpu.pipeline_mode<synchronous>, transform_indices = @transform_14, window_bounds = array<i64: 32, 32>}, {transform_indices = @transform_15, window_bounds = array<i64: 32, 32>}]} {
    %c0 = arith.constant 0 : index
    %c0_0 = arith.constant 0 : index
    %0 = vector.load %arg9[%c0, %c0_0] : memref<32x32xf32, #tpu.memory_space<vmem>>, vector<32x32xf32>
    %c0_1 = arith.constant 0 : index
    %c0_2 = arith.constant 0 : index
    %1 = vector.load %arg1[%c0_1, %c0_2] : memref<32x32xf32, #tpu.memory_space<vmem>>, vector<32x32xf32>
    %c0_3 = arith.constant 0 : index
    %c0_4 = arith.constant 0 : index
    %2 = vector.load %arg2[%c0_3, %c0_4] : memref<32x64xf32, #tpu.memory_space<vmem>>, vector<32x64xf32>
    %cst = arith.constant dense<0.000000e+00> : vector<32x64xf32>
    %3 = tpu.matmul %1, %2, %cst {dimension_numbers = #tpu.dot_dimension_numbers<[1], [0], [0], [1], [0, 0, 1, 1], [], []>} : vector<32x32xf32>, vector<32x64xf32>, vector<32x64xf32> -> vector<32x64xf32>
    %c0_5 = arith.constant 0 : index
    %c0_6 = arith.constant 0 : index
    %4 = vector.load %arg3[%c0_5, %c0_6] : memref<1x64xf32, #tpu.memory_space<vmem>>, vector<1x64xf32>
    %5 = vector.broadcast %4 : vector<1x64xf32> to vector<32x64xf32>
    %6 = arith.addf %3, %5 : vector<32x64xf32>
    %c0_7 = arith.constant 0 : index
    %c0_8 = arith.constant 0 : index
    %7 = vector.load %arg4[%c0_7, %c0_8] : memref<32x64xf32, #tpu.memory_space<vmem>>, vector<32x64xf32>
    %c0_9 = arith.constant 0 : index
    %c0_10 = arith.constant 0 : index
    %8 = vector.load %arg5[%c0_9, %c0_10] : memref<32x64xf32, #tpu.memory_space<vmem>>, vector<32x64xf32>
    %cst_11 = arith.constant dense<0.000000e+00> : vector<32x64xf32>
    %9 = tpu.matmul %0, %6, %cst_11 {dimension_numbers = #tpu.dot_dimension_numbers<[1], [0], [0], [1], [0, 0, 1, 1], [], []>} : vector<32x32xf32>, vector<32x64xf32>, vector<32x64xf32> -> vector<32x64xf32>
    %cst_12 = arith.constant dense<0.000000e+00> : vector<32xf32>
    %10 = vector.multi_reduction <add>, %9, %cst_12 [1] : vector<32x64xf32> to vector<32xf32>
    %11 = vector.shape_cast %10 : vector<32xf32> to vector<32x1xf32>
    %12 = arith.mulf %6, %6 : vector<32x64xf32>
    %cst_13 = arith.constant dense<0.000000e+00> : vector<32x64xf32>
    %13 = tpu.matmul %0, %12, %cst_13 {dimension_numbers = #tpu.dot_dimension_numbers<[1], [0], [0], [1], [0, 0, 1, 1], [], []>} : vector<32x32xf32>, vector<32x64xf32>, vector<32x64xf32> -> vector<32x64xf32>
    %cst_14 = arith.constant dense<0.000000e+00> : vector<32xf32>
    %14 = vector.multi_reduction <add>, %13, %cst_14 [1] : vector<32x64xf32> to vector<32xf32>
    %15 = vector.shape_cast %14 : vector<32xf32> to vector<32x1xf32>
    %cst_15 = arith.constant 0.001953125 : f32
    %16 = vector.broadcast %cst_15 : f32 to vector<32x1xf32>
    %17 = arith.mulf %11, %16 : vector<32x1xf32>
    %cst_16 = arith.constant 0.001953125 : f32
    %18 = vector.broadcast %cst_16 : f32 to vector<32x1xf32>
    %19 = arith.mulf %15, %18 : vector<32x1xf32>
    %20 = arith.mulf %17, %17 : vector<32x1xf32>
    %21 = arith.subf %19, %20 : vector<32x1xf32>
    %22 = vector.broadcast %17 : vector<32x1xf32> to vector<32x64xf32>
    %23 = arith.subf %6, %22 : vector<32x64xf32>
    %cst_17 = arith.constant 9.99999974E-6 : f32
    %24 = vector.broadcast %cst_17 : f32 to vector<32x1xf32>
    %25 = arith.addf %21, %24 : vector<32x1xf32>
    %26 = math.rsqrt %25 : vector<32x1xf32>
    %27 = vector.broadcast %26 : vector<32x1xf32> to vector<32x64xf32>
    %28 = arith.mulf %23, %27 : vector<32x64xf32>
    %29 = arith.mulf %28, %7 : vector<32x64xf32>
    %30 = arith.addf %29, %8 : vector<32x64xf32>
    %cst_18 = arith.constant 5.000000e-01 : f32
    %31 = vector.broadcast %cst_18 : f32 to vector<32x64xf32>
    %32 = arith.mulf %31, %30 : vector<32x64xf32>
    %cst_19 = arith.constant 0.707106769 : f32
    %33 = vector.broadcast %cst_19 : f32 to vector<32x64xf32>
    %34 = arith.mulf %30, %33 : vector<32x64xf32>
    %35 = math.absf %34 : vector<32x64xf32>
    %cst_20 = arith.constant 0.327591091 : f32
    %36 = vector.broadcast %cst_20 : f32 to vector<32x64xf32>
    %37 = arith.mulf %36, %35 : vector<32x64xf32>
    %cst_21 = arith.constant 1.000000e+00 : f32
    %38 = vector.broadcast %cst_21 : f32 to vector<32x64xf32>
    %39 = arith.addf %38, %37 : vector<32x64xf32>
    %cst_22 = arith.constant 1.000000e+00 : f32
    %40 = vector.broadcast %cst_22 : f32 to vector<32x64xf32>
    %41 = arith.divf %40, %39 : vector<32x64xf32>
    %cst_23 = arith.constant 1.06140542 : f32
    %42 = vector.broadcast %cst_23 : f32 to vector<32x64xf32>
    %43 = arith.mulf %42, %41 : vector<32x64xf32>
    %cst_24 = arith.constant -1.45315206 : f32
    %44 = vector.broadcast %cst_24 : f32 to vector<32x64xf32>
    %45 = arith.addf %43, %44 : vector<32x64xf32>
    %46 = arith.mulf %45, %41 : vector<32x64xf32>
    %cst_25 = arith.constant 1.42141378 : f32
    %47 = vector.broadcast %cst_25 : f32 to vector<32x64xf32>
    %48 = arith.addf %46, %47 : vector<32x64xf32>
    %49 = arith.mulf %48, %41 : vector<32x64xf32>
    %cst_26 = arith.constant -0.284496725 : f32
    %50 = vector.broadcast %cst_26 : f32 to vector<32x64xf32>
    %51 = arith.addf %49, %50 : vector<32x64xf32>
    %52 = arith.mulf %51, %41 : vector<32x64xf32>
    %cst_27 = arith.constant 0.254829586 : f32
    %53 = vector.broadcast %cst_27 : f32 to vector<32x64xf32>
    %54 = arith.addf %52, %53 : vector<32x64xf32>
    %55 = arith.mulf %54, %41 : vector<32x64xf32>
    %cst_28 = arith.constant 0.000000e+00 : f32
    %56 = vector.broadcast %cst_28 : f32 to vector<32x64xf32>
    %57 = arith.subf %56, %35 : vector<32x64xf32>
    %58 = arith.mulf %57, %35 : vector<32x64xf32>
    %59 = math.exp %58 : vector<32x64xf32>
    %60 = arith.mulf %55, %59 : vector<32x64xf32>
    %cst_29 = arith.constant 1.000000e+00 : f32
    %61 = vector.broadcast %cst_29 : f32 to vector<32x64xf32>
    %62 = arith.subf %61, %60 : vector<32x64xf32>
    %cst_30 = arith.constant 0.000000e+00 : f32
    %63 = vector.broadcast %cst_30 : f32 to vector<32x64xf32>
    %64 = arith.cmpf oge, %34, %63 : vector<32x64xf32>
    %cst_31 = arith.constant 0.000000e+00 : f32
    %65 = vector.broadcast %cst_31 : f32 to vector<32x64xf32>
    %66 = arith.subf %65, %62 : vector<32x64xf32>
    %67 = arith.select %64, %62, %66 : vector<32x64xi1>, vector<32x64xf32>
    %cst_32 = arith.constant 1.000000e+00 : f32
    %68 = vector.broadcast %cst_32 : f32 to vector<32x64xf32>
    %69 = arith.addf %68, %67 : vector<32x64xf32>
    %70 = arith.mulf %32, %69 : vector<32x64xf32>
    %c0_33 = arith.constant 0 : index
    %c0_34 = arith.constant 0 : index
    %c0_35 = arith.constant 0 : index
    %71 = vector.load %arg6[%c0_33, %c0_34, %c0_35] : memref<3x64x64xf32, #tpu.memory_space<vmem>>, vector<1x64x64xf32>
    %72 = vector.shape_cast %71 : vector<1x64x64xf32> to vector<64x64xf32>
    %cst_36 = arith.constant dense<0.000000e+00> : vector<32x64xf32>
    %73 = tpu.matmul %70, %72, %cst_36 {dimension_numbers = #tpu.dot_dimension_numbers<[1], [0], [0], [1], [0, 0, 1, 1], [], []>} : vector<32x64xf32>, vector<64x64xf32>, vector<32x64xf32> -> vector<32x64xf32>
    %c1 = arith.constant 1 : index
    %c0_37 = arith.constant 0 : index
    %c0_38 = arith.constant 0 : index
    %74 = vector.load %arg6[%c1, %c0_37, %c0_38] : memref<3x64x64xf32, #tpu.memory_space<vmem>>, vector<1x64x64xf32>
    %75 = vector.shape_cast %74 : vector<1x64x64xf32> to vector<64x64xf32>
    %cst_39 = arith.constant dense<0.000000e+00> : vector<32x64xf32>
    %76 = tpu.matmul %70, %75, %cst_39 {dimension_numbers = #tpu.dot_dimension_numbers<[1], [0], [0], [1], [0, 0, 1, 1], [], []>} : vector<32x64xf32>, vector<64x64xf32>, vector<32x64xf32> -> vector<32x64xf32>
    %c2 = arith.constant 2 : index
    %c0_40 = arith.constant 0 : index
    %c0_41 = arith.constant 0 : index
    %77 = vector.load %arg6[%c2, %c0_40, %c0_41] : memref<3x64x64xf32, #tpu.memory_space<vmem>>, vector<1x64x64xf32>
    %78 = vector.shape_cast %77 : vector<1x64x64xf32> to vector<64x64xf32>
    %cst_42 = arith.constant dense<0.000000e+00> : vector<32x64xf32>
    %79 = tpu.matmul %70, %78, %cst_42 {dimension_numbers = #tpu.dot_dimension_numbers<[1], [0], [0], [1], [0, 0, 1, 1], [], []>} : vector<32x64xf32>, vector<64x64xf32>, vector<32x64xf32> -> vector<32x64xf32>
    %c0_43 = arith.constant 0 : index
    %c0_44 = arith.constant 0 : index
    %c0_45 = arith.constant 0 : index
    %80 = vector.load %arg8[%c0_43, %c0_44, %c0_45] : memref<2x32x32xf32, #tpu.memory_space<vmem>>, vector<1x32x32xf32>
    %81 = vector.shape_cast %80 : vector<1x32x32xf32> to vector<32x32xf32>
    %cst_46 = arith.constant dense<0.000000e+00> : vector<32x64xf32>
    %82 = tpu.matmul %81, %73, %cst_46 {dimension_numbers = #tpu.dot_dimension_numbers<[1], [0], [0], [1], [0, 0, 1, 1], [], []>} : vector<32x32xf32>, vector<32x64xf32>, vector<32x64xf32> -> vector<32x64xf32>
    %83 = arith.addf %82, %76 : vector<32x64xf32>
    %c1_47 = arith.constant 1 : index
    %c0_48 = arith.constant 0 : index
    %c0_49 = arith.constant 0 : index
    %84 = vector.load %arg8[%c1_47, %c0_48, %c0_49] : memref<2x32x32xf32, #tpu.memory_space<vmem>>, vector<1x32x32xf32>
    %85 = vector.shape_cast %84 : vector<1x32x32xf32> to vector<32x32xf32>
    %cst_50 = arith.constant dense<0.000000e+00> : vector<32x64xf32>
    %86 = tpu.matmul %85, %79, %cst_50 {dimension_numbers = #tpu.dot_dimension_numbers<[1], [0], [0], [1], [0, 0, 1, 1], [], []>} : vector<32x32xf32>, vector<32x64xf32>, vector<32x64xf32> -> vector<32x64xf32>
    %87 = arith.addf %83, %86 : vector<32x64xf32>
    %c0_51 = arith.constant 0 : index
    %c0_52 = arith.constant 0 : index
    %88 = vector.load %arg7[%c0_51, %c0_52] : memref<1x64xf32, #tpu.memory_space<vmem>>, vector<1x64xf32>
    %89 = vector.broadcast %88 : vector<1x64xf32> to vector<32x64xf32>
    %90 = arith.addf %87, %89 : vector<32x64xf32>
    %c0_53 = arith.constant 0 : index
    %c0_54 = arith.constant 0 : index
    %91 = vector.load %arg10[%c0_53, %c0_54] : memref<32x64xf32, #tpu.memory_space<vmem>>, vector<32x64xf32>
    %c0_55 = arith.constant 0 : index
    %c0_56 = arith.constant 0 : index
    %92 = vector.load %arg11[%c0_55, %c0_56] : memref<32x64xf32, #tpu.memory_space<vmem>>, vector<32x64xf32>
    %cst_57 = arith.constant dense<0.000000e+00> : vector<32x64xf32>
    %93 = tpu.matmul %0, %90, %cst_57 {dimension_numbers = #tpu.dot_dimension_numbers<[1], [0], [0], [1], [0, 0, 1, 1], [], []>} : vector<32x32xf32>, vector<32x64xf32>, vector<32x64xf32> -> vector<32x64xf32>
    %cst_58 = arith.constant dense<0.000000e+00> : vector<32xf32>
    %94 = vector.multi_reduction <add>, %93, %cst_58 [1] : vector<32x64xf32> to vector<32xf32>
    %95 = vector.shape_cast %94 : vector<32xf32> to vector<32x1xf32>
    %96 = arith.mulf %90, %90 : vector<32x64xf32>
    %cst_59 = arith.constant dense<0.000000e+00> : vector<32x64xf32>
    %97 = tpu.matmul %0, %96, %cst_59 {dimension_numbers = #tpu.dot_dimension_numbers<[1], [0], [0], [1], [0, 0, 1, 1], [], []>} : vector<32x32xf32>, vector<32x64xf32>, vector<32x64xf32> -> vector<32x64xf32>
    %cst_60 = arith.constant dense<0.000000e+00> : vector<32xf32>
    %98 = vector.multi_reduction <add>, %97, %cst_60 [1] : vector<32x64xf32> to vector<32xf32>
    %99 = vector.shape_cast %98 : vector<32xf32> to vector<32x1xf32>
    %cst_61 = arith.constant 0.001953125 : f32
    %100 = vector.broadcast %cst_61 : f32 to vector<32x1xf32>
    %101 = arith.mulf %95, %100 : vector<32x1xf32>
    %cst_62 = arith.constant 0.001953125 : f32
    %102 = vector.broadcast %cst_62 : f32 to vector<32x1xf32>
    %103 = arith.mulf %99, %102 : vector<32x1xf32>
    %104 = arith.mulf %101, %101 : vector<32x1xf32>
    %105 = arith.subf %103, %104 : vector<32x1xf32>
    %106 = vector.broadcast %101 : vector<32x1xf32> to vector<32x64xf32>
    %107 = arith.subf %90, %106 : vector<32x64xf32>
    %cst_63 = arith.constant 9.99999974E-6 : f32
    %108 = vector.broadcast %cst_63 : f32 to vector<32x1xf32>
    %109 = arith.addf %105, %108 : vector<32x1xf32>
    %110 = math.rsqrt %109 : vector<32x1xf32>
    %111 = vector.broadcast %110 : vector<32x1xf32> to vector<32x64xf32>
    %112 = arith.mulf %107, %111 : vector<32x64xf32>
    %113 = arith.mulf %112, %91 : vector<32x64xf32>
    %114 = arith.addf %113, %92 : vector<32x64xf32>
    %cst_64 = arith.constant 5.000000e-01 : f32
    %115 = vector.broadcast %cst_64 : f32 to vector<32x64xf32>
    %116 = arith.mulf %115, %114 : vector<32x64xf32>
    %cst_65 = arith.constant 0.707106769 : f32
    %117 = vector.broadcast %cst_65 : f32 to vector<32x64xf32>
    %118 = arith.mulf %114, %117 : vector<32x64xf32>
    %119 = math.absf %118 : vector<32x64xf32>
    %cst_66 = arith.constant 0.327591091 : f32
    %120 = vector.broadcast %cst_66 : f32 to vector<32x64xf32>
    %121 = arith.mulf %120, %119 : vector<32x64xf32>
    %cst_67 = arith.constant 1.000000e+00 : f32
    %122 = vector.broadcast %cst_67 : f32 to vector<32x64xf32>
    %123 = arith.addf %122, %121 : vector<32x64xf32>
    %cst_68 = arith.constant 1.000000e+00 : f32
    %124 = vector.broadcast %cst_68 : f32 to vector<32x64xf32>
    %125 = arith.divf %124, %123 : vector<32x64xf32>
    %cst_69 = arith.constant 1.06140542 : f32
    %126 = vector.broadcast %cst_69 : f32 to vector<32x64xf32>
    %127 = arith.mulf %126, %125 : vector<32x64xf32>
    %cst_70 = arith.constant -1.45315206 : f32
    %128 = vector.broadcast %cst_70 : f32 to vector<32x64xf32>
    %129 = arith.addf %127, %128 : vector<32x64xf32>
    %130 = arith.mulf %129, %125 : vector<32x64xf32>
    %cst_71 = arith.constant 1.42141378 : f32
    %131 = vector.broadcast %cst_71 : f32 to vector<32x64xf32>
    %132 = arith.addf %130, %131 : vector<32x64xf32>
    %133 = arith.mulf %132, %125 : vector<32x64xf32>
    %cst_72 = arith.constant -0.284496725 : f32
    %134 = vector.broadcast %cst_72 : f32 to vector<32x64xf32>
    %135 = arith.addf %133, %134 : vector<32x64xf32>
    %136 = arith.mulf %135, %125 : vector<32x64xf32>
    %cst_73 = arith.constant 0.254829586 : f32
    %137 = vector.broadcast %cst_73 : f32 to vector<32x64xf32>
    %138 = arith.addf %136, %137 : vector<32x64xf32>
    %139 = arith.mulf %138, %125 : vector<32x64xf32>
    %cst_74 = arith.constant 0.000000e+00 : f32
    %140 = vector.broadcast %cst_74 : f32 to vector<32x64xf32>
    %141 = arith.subf %140, %119 : vector<32x64xf32>
    %142 = arith.mulf %141, %119 : vector<32x64xf32>
    %143 = math.exp %142 : vector<32x64xf32>
    %144 = arith.mulf %139, %143 : vector<32x64xf32>
    %cst_75 = arith.constant 1.000000e+00 : f32
    %145 = vector.broadcast %cst_75 : f32 to vector<32x64xf32>
    %146 = arith.subf %145, %144 : vector<32x64xf32>
    %cst_76 = arith.constant 0.000000e+00 : f32
    %147 = vector.broadcast %cst_76 : f32 to vector<32x64xf32>
    %148 = arith.cmpf oge, %118, %147 : vector<32x64xf32>
    %cst_77 = arith.constant 0.000000e+00 : f32
    %149 = vector.broadcast %cst_77 : f32 to vector<32x64xf32>
    %150 = arith.subf %149, %146 : vector<32x64xf32>
    %151 = arith.select %148, %146, %150 : vector<32x64xi1>, vector<32x64xf32>
    %cst_78 = arith.constant 1.000000e+00 : f32
    %152 = vector.broadcast %cst_78 : f32 to vector<32x64xf32>
    %153 = arith.addf %152, %151 : vector<32x64xf32>
    %154 = arith.mulf %116, %153 : vector<32x64xf32>
    %c0_79 = arith.constant 0 : index
    %c0_80 = arith.constant 0 : index
    %155 = vector.load %arg12[%c0_79, %c0_80] : memref<64x32xf32, #tpu.memory_space<vmem>>, vector<64x32xf32>
    %cst_81 = arith.constant dense<0.000000e+00> : vector<32x32xf32>
    %156 = tpu.matmul %154, %155, %cst_81 {dimension_numbers = #tpu.dot_dimension_numbers<[1], [0], [0], [1], [0, 0, 1, 1], [], []>} : vector<32x64xf32>, vector<64x32xf32>, vector<32x32xf32> -> vector<32x32xf32>
    %c0_82 = arith.constant 0 : index
    %c0_83 = arith.constant 0 : index
    %157 = vector.load %arg13[%c0_82, %c0_83] : memref<1x32xf32, #tpu.memory_space<vmem>>, vector<1x32xf32>
    %158 = vector.broadcast %157 : vector<1x32xf32> to vector<32x32xf32>
    %159 = arith.addf %156, %158 : vector<32x32xf32>
    %c0_84 = arith.constant 0 : index
    %c0_85 = arith.constant 0 : index
    %160 = vector.load %arg14[%c0_84, %c0_85] : memref<32x32xf32, #tpu.memory_space<vmem>>, vector<32x32xf32>
    %c0_86 = arith.constant 0 : index
    %c0_87 = arith.constant 0 : index
    %161 = vector.load %arg15[%c0_86, %c0_87] : memref<32x32xf32, #tpu.memory_space<vmem>>, vector<32x32xf32>
    %cst_88 = arith.constant dense<0.000000e+00> : vector<32x32xf32>
    %162 = tpu.matmul %0, %159, %cst_88 {dimension_numbers = #tpu.dot_dimension_numbers<[1], [0], [0], [1], [0, 0, 1, 1], [], []>} : vector<32x32xf32>, vector<32x32xf32>, vector<32x32xf32> -> vector<32x32xf32>
    %cst_89 = arith.constant dense<0.000000e+00> : vector<32xf32>
    %163 = vector.multi_reduction <add>, %162, %cst_89 [1] : vector<32x32xf32> to vector<32xf32>
    %164 = vector.shape_cast %163 : vector<32xf32> to vector<32x1xf32>
    %165 = arith.mulf %159, %159 : vector<32x32xf32>
    %cst_90 = arith.constant dense<0.000000e+00> : vector<32x32xf32>
    %166 = tpu.matmul %0, %165, %cst_90 {dimension_numbers = #tpu.dot_dimension_numbers<[1], [0], [0], [1], [0, 0, 1, 1], [], []>} : vector<32x32xf32>, vector<32x32xf32>, vector<32x32xf32> -> vector<32x32xf32>
    %cst_91 = arith.constant dense<0.000000e+00> : vector<32xf32>
    %167 = vector.multi_reduction <add>, %166, %cst_91 [1] : vector<32x32xf32> to vector<32xf32>
    %168 = vector.shape_cast %167 : vector<32xf32> to vector<32x1xf32>
    %cst_92 = arith.constant 3.906250e-03 : f32
    %169 = vector.broadcast %cst_92 : f32 to vector<32x1xf32>
    %170 = arith.mulf %164, %169 : vector<32x1xf32>
    %cst_93 = arith.constant 3.906250e-03 : f32
    %171 = vector.broadcast %cst_93 : f32 to vector<32x1xf32>
    %172 = arith.mulf %168, %171 : vector<32x1xf32>
    %173 = arith.mulf %170, %170 : vector<32x1xf32>
    %174 = arith.subf %172, %173 : vector<32x1xf32>
    %175 = vector.broadcast %170 : vector<32x1xf32> to vector<32x32xf32>
    %176 = arith.subf %159, %175 : vector<32x32xf32>
    %cst_94 = arith.constant 9.99999974E-6 : f32
    %177 = vector.broadcast %cst_94 : f32 to vector<32x1xf32>
    %178 = arith.addf %174, %177 : vector<32x1xf32>
    %179 = math.rsqrt %178 : vector<32x1xf32>
    %180 = vector.broadcast %179 : vector<32x1xf32> to vector<32x32xf32>
    %181 = arith.mulf %176, %180 : vector<32x32xf32>
    %182 = arith.mulf %181, %160 : vector<32x32xf32>
    %183 = arith.addf %182, %161 : vector<32x32xf32>
    %cst_95 = arith.constant 5.000000e-01 : f32
    %184 = vector.broadcast %cst_95 : f32 to vector<32x32xf32>
    %185 = arith.mulf %184, %183 : vector<32x32xf32>
    %cst_96 = arith.constant 0.707106769 : f32
    %186 = vector.broadcast %cst_96 : f32 to vector<32x32xf32>
    %187 = arith.mulf %183, %186 : vector<32x32xf32>
    %188 = math.absf %187 : vector<32x32xf32>
    %cst_97 = arith.constant 0.327591091 : f32
    %189 = vector.broadcast %cst_97 : f32 to vector<32x32xf32>
    %190 = arith.mulf %189, %188 : vector<32x32xf32>
    %cst_98 = arith.constant 1.000000e+00 : f32
    %191 = vector.broadcast %cst_98 : f32 to vector<32x32xf32>
    %192 = arith.addf %191, %190 : vector<32x32xf32>
    %cst_99 = arith.constant 1.000000e+00 : f32
    %193 = vector.broadcast %cst_99 : f32 to vector<32x32xf32>
    %194 = arith.divf %193, %192 : vector<32x32xf32>
    %cst_100 = arith.constant 1.06140542 : f32
    %195 = vector.broadcast %cst_100 : f32 to vector<32x32xf32>
    %196 = arith.mulf %195, %194 : vector<32x32xf32>
    %cst_101 = arith.constant -1.45315206 : f32
    %197 = vector.broadcast %cst_101 : f32 to vector<32x32xf32>
    %198 = arith.addf %196, %197 : vector<32x32xf32>
    %199 = arith.mulf %198, %194 : vector<32x32xf32>
    %cst_102 = arith.constant 1.42141378 : f32
    %200 = vector.broadcast %cst_102 : f32 to vector<32x32xf32>
    %201 = arith.addf %199, %200 : vector<32x32xf32>
    %202 = arith.mulf %201, %194 : vector<32x32xf32>
    %cst_103 = arith.constant -0.284496725 : f32
    %203 = vector.broadcast %cst_103 : f32 to vector<32x32xf32>
    %204 = arith.addf %202, %203 : vector<32x32xf32>
    %205 = arith.mulf %204, %194 : vector<32x32xf32>
    %cst_104 = arith.constant 0.254829586 : f32
    %206 = vector.broadcast %cst_104 : f32 to vector<32x32xf32>
    %207 = arith.addf %205, %206 : vector<32x32xf32>
    %208 = arith.mulf %207, %194 : vector<32x32xf32>
    %cst_105 = arith.constant 0.000000e+00 : f32
    %209 = vector.broadcast %cst_105 : f32 to vector<32x32xf32>
    %210 = arith.subf %209, %188 : vector<32x32xf32>
    %211 = arith.mulf %210, %188 : vector<32x32xf32>
    %212 = math.exp %211 : vector<32x32xf32>
    %213 = arith.mulf %208, %212 : vector<32x32xf32>
    %cst_106 = arith.constant 1.000000e+00 : f32
    %214 = vector.broadcast %cst_106 : f32 to vector<32x32xf32>
    %215 = arith.subf %214, %213 : vector<32x32xf32>
    %cst_107 = arith.constant 0.000000e+00 : f32
    %216 = vector.broadcast %cst_107 : f32 to vector<32x32xf32>
    %217 = arith.cmpf oge, %187, %216 : vector<32x32xf32>
    %cst_108 = arith.constant 0.000000e+00 : f32
    %218 = vector.broadcast %cst_108 : f32 to vector<32x32xf32>
    %219 = arith.subf %218, %215 : vector<32x32xf32>
    %220 = arith.select %217, %215, %219 : vector<32x32xi1>, vector<32x32xf32>
    %cst_109 = arith.constant 1.000000e+00 : f32
    %221 = vector.broadcast %cst_109 : f32 to vector<32x32xf32>
    %222 = arith.addf %221, %220 : vector<32x32xf32>
    %223 = arith.mulf %185, %222 : vector<32x32xf32>
    %c0_110 = arith.constant 0 : index
    %c0_111 = arith.constant 0 : index
    %224 = vector.load %arg16[%c0_110, %c0_111] : memref<32x32xf32, #tpu.memory_space<vmem>>, vector<32x32xf32>
    tpu.vector_store %arg16[%c0_110, %c0_111], %223 {strides = array<i32>} : memref<32x32xf32, #tpu.memory_space<vmem>>, vector<32x32xf32>,
    return
  }
  func.func @transform_0(%arg0: i32) -> (i32, i32) {
    %c0_i32 = arith.constant 0 : i32
    %c0_i32_0 = arith.constant 0 : i32
    return %arg0, %c0_i32 : i32, i32
  }
  func.func @transform_1(%arg0: i32) -> (i32, i32) {
    %c0_i32 = arith.constant 0 : i32
    %c0_i32_0 = arith.constant 0 : i32
    %c0_i32_1 = arith.constant 0 : i32
    return %c0_i32, %c0_i32_0 : i32, i32
  }
  func.func @transform_2(%arg0: i32) -> (i32, i32) {
    %c0_i32 = arith.constant 0 : i32
    %c0_i32_0 = arith.constant 0 : i32
    %c0_i32_1 = arith.constant 0 : i32
    return %c0_i32, %c0_i32_0 : i32, i32
  }
  func.func @transform_3(%arg0: i32) -> (i32, i32) {
    %c0_i32 = arith.constant 0 : i32
    %c0_i32_0 = arith.constant 0 : i32
    %c0_i32_1 = arith.constant 0 : i32
    return %c0_i32, %c0_i32_0 : i32, i32
  }
  func.func @transform_4(%arg0: i32) -> (i32, i32) {
    %c0_i32 = arith.constant 0 : i32
    %c0_i32_0 = arith.constant 0 : i32
    %c0_i32_1 = arith.constant 0 : i32
    return %c0_i32, %c0_i32_0 : i32, i32
  }
  func.func @transform_5(%arg0: i32) -> (i32, i32, i32) {
    %c0_i32 = arith.constant 0 : i32
    %c0_i32_0 = arith.constant 0 : i32
    %c0_i32_1 = arith.constant 0 : i32
    %c0_i32_2 = arith.constant 0 : i32
    return %c0_i32, %c0_i32_0, %c0_i32_1 : i32, i32, i32
  }
  func.func @transform_6(%arg0: i32) -> (i32, i32) {
    %c0_i32 = arith.constant 0 : i32
    %c0_i32_0 = arith.constant 0 : i32
    %c0_i32_1 = arith.constant 0 : i32
    return %c0_i32, %c0_i32_0 : i32, i32
  }
  func.func @transform_7(%arg0: i32) -> (i32, i32, i32) {
    %c0_i32 = arith.constant 0 : i32
    %c0_i32_0 = arith.constant 0 : i32
    %c0_i32_1 = arith.constant 0 : i32
    %c0_i32_2 = arith.constant 0 : i32
    return %c0_i32, %c0_i32_0, %c0_i32_1 : i32, i32, i32
  }
  func.func @transform_8(%arg0: i32) -> (i32, i32) {
    %c0_i32 = arith.constant 0 : i32
    %c0_i32_0 = arith.constant 0 : i32
    %c0_i32_1 = arith.constant 0 : i32
    return %c0_i32, %c0_i32_0 : i32, i32
  }
  func.func @transform_9(%arg0: i32) -> (i32, i32) {
    %c0_i32 = arith.constant 0 : i32
    %c0_i32_0 = arith.constant 0 : i32
    %c0_i32_1 = arith.constant 0 : i32
    return %c0_i32, %c0_i32_0 : i32, i32
  }
  func.func @transform_10(%arg0: i32) -> (i32, i32) {
    %c0_i32 = arith.constant 0 : i32
    %c0_i32_0 = arith.constant 0 : i32
    %c0_i32_1 = arith.constant 0 : i32
    return %c0_i32, %c0_i32_0 : i32, i32
  }
  func.func @transform_11(%arg0: i32) -> (i32, i32) {
    %c0_i32 = arith.constant 0 : i32
    %c0_i32_0 = arith.constant 0 : i32
    %c0_i32_1 = arith.constant 0 : i32
    return %c0_i32, %c0_i32_0 : i32, i32
  }
  func.func @transform_12(%arg0: i32) -> (i32, i32) {
    %c0_i32 = arith.constant 0 : i32
    %c0_i32_0 = arith.constant 0 : i32
    %c0_i32_1 = arith.constant 0 : i32
    return %c0_i32, %c0_i32_0 : i32, i32
  }
  func.func @transform_13(%arg0: i32) -> (i32, i32) {
    %c0_i32 = arith.constant 0 : i32
    %c0_i32_0 = arith.constant 0 : i32
    %c0_i32_1 = arith.constant 0 : i32
    return %c0_i32, %c0_i32_0 : i32, i32
  }
  func.func @transform_14(%arg0: i32) -> (i32, i32) {
    %c0_i32 = arith.constant 0 : i32
    %c0_i32_0 = arith.constant 0 : i32
    %c0_i32_1 = arith.constant 0 : i32
    return %c0_i32, %c0_i32_0 : i32, i32
  }
  func.func @transform_15(%arg0: i32) -> (i32, i32) {
    %c0_i32 = arith.constant 0 : i32
    %c0_i32_0 = arith.constant 0 : i32
    return %arg0, %c0_i32 : i32, i32
  }
}

</mosaic_0001>

<bundles_post_ra>
// kernel: tile.42
= control target key start
LH: loop header
LB: loop body
LE: loop exit
PB: predicated region body
PF: predicated region fallthrough
CT: control target
= control target key end

     0   :  { %s22_s0 = inlined_call_operand.vmem [shape: f32[8], index: 0, kind: input, shape index: {}]   ;;  %s23_s1 = inlined_call_operand.vmem [shape: f32[8,8], index: 1, kind: output, shape index: {}]  }
   0x1   :  { %v4_v0 = vld [vmem:[%s22_s0] ss:$0 sm:$0xff] }
   0x2   :  { %5 = vst [vmem:[%s23_s1] sm:$0xff] %v4_v0 }

// kernel: tile.43
= control target key start
LH: loop header
LB: loop body
LE: loop exit
PB: predicated region body
PF: predicated region fallthrough
CT: control target
= control target key end

     0   :  { %s67_s10 = smov 56   ;;  %s68_s11 = smov 40   ;;  %vm3_vm0 = vcmask 64512   ;;  %vm9_vm1 = vcmask 523712   ;;  %vm15_vm2 = vcmask 458112   ;;  %vm21_vm3 = vcmask 392512   ;;  %s111_s0 = inlined_call_operand.vmem [shape: f32[8,8], index: 0, kind: input, shape index: {}]   ;;  %s112_s1 = inlined_call_operand.vmem [shape: f32[1,64], index: 1, kind: output, shape index: {}]  }
   0x1   :  { %v53_v0 = vld [vmem:[%s111_s0 + $0x7] sm:$0x1]   ;;  %v55_v1 = vld [vmem:[%s111_s0 + $0x5] sm:$0x1]   ;;  %v57_v2 = vld [vmem:[%s111_s0 + $0x3] sm:$0x1]  }
   0x2   :  { %7 = vrot.lane.b32.xlu0 %v53_v0, %s67_s10  ;;  %19 = vrot.lane.b32.xlu1 %v55_v1, %s68_s11  ;;  %s69_s14 = smov 24   ;;  %v54_v3 = vld [vmem:[%s111_s0 + $0x6] sm:$0x1]   ;;  %v56_v4 = vld [vmem:[%s111_s0 + $0x4] sm:$0x1]   ;;  %s70_s21 = smov 48  }
   0x3   :  { %31 = vrot.lane.b32.xlu2 %v57_v2, %s69_s14  ;;  %v58_v5 = vld [vmem:[%s111_s0 + $0x2] sm:$0x1]   ;;  %s71_s22 = smov 32   ;;  %s72_s23 = smov 16   ;;  %v59_v6 = vld [vmem:[%s111_s0 + $0x1] sm:$0x1]  }
   0x4   :  { %s73_s26 = smov 8   ;;  %v2_v7 = vld [vmem:[%s111_s0] sm:$0x1]   ;;  %vm27_vm4 = vcmask 326912   ;;  %vm33_vm5 = vcmask 261312   ;;  %vm39_vm6 = vcmask 195712  }
   0x5   :  { %4 = vst.msk [vmem:[#allocation0] sm:$0x1] %vm3_vm0, %v2_v7   ;;  %vm45_vm7 = vcmask 130112  }
   0xa   :  { %13 = vrot.lane.b32.xlu0 %v54_v3, %s70_s21  ;;  %25 = vrot.lane.b32.xlu1 %v56_v4, %s71_s22 }
   0xb   :  { %37 = vrot.lane.b32.xlu2 %v58_v5, %s72_s23 }
  0x12   :  { %43 = vrot.lane.b32.xlu0 %v59_v6, %s73_s26 }
  0x5d   :  { %v32_v8 = vpop.permute.xlu2 %31  }
  0x65   :  { %v38_v9 = vpop.permute.xlu2 %37  }
  0x74   :  { %v8_v10 = vpop.permute.xlu0 %7   ;;  %v20_v11 = vpop.permute.xlu1 %19  }
  0x75   :  { %10 = vst.msk [vmem:[#allocation0] sm:$0x1] %vm9_vm1, %v8_v10  }
  0x7c   :  { %v14_v12 = vpop.permute.xlu0 %13   ;;  %v26_v13 = vpop.permute.xlu1 %25  }
  0x7d   :  { %16 = vst.msk [vmem:[#allocation0] sm:$0x1] %vm15_vm2, %v14_v12  }
  0x7e   :  { %22 = vst.msk [vmem:[#allocation0] sm:$0x1] %vm21_vm3, %v20_v11  }
  0x7f   :  { %28 = vst.msk [vmem:[#allocation0] sm:$0x1] %vm27_vm4, %v26_v13  }
  0x80   :  { %34 = vst.msk [vmem:[#allocation0] sm:$0x1] %vm33_vm5, %v32_v8  }
  0x81   :  { %40 = vst.msk [vmem:[#allocation0] sm:$0x1] %vm39_vm6, %v38_v9  }
  0x84   :  { %v44_v14 = vpop.permute.xlu0 %43  }
  0x85   :  { %46 = vst.msk [vmem:[#allocation0] sm:$0x1] %vm45_vm7, %v44_v14  }
  0x8c   :  { %v49_v15 = vld [vmem:[#allocation0] sm:$0x1] }
  0x8d   :  { %52 = vst [vmem:[%s112_s1] sm:$0x1] %v49_v15 }

// kernel: tile.47
= control target key start
LH: loop header
LB: loop body
LE: loop exit
PB: predicated region body
PF: predicated region fallthrough
CT: control target
= control target key end

     0   :  { %s22_s0 = inlined_call_operand.vmem [shape: f32[4], index: 0, kind: input, shape index: {}]   ;;  %s23_s1 = inlined_call_operand.vmem [shape: f32[8,4], index: 1, kind: output, shape index: {}]  }
   0x1   :  { %v4_v0 = vld [vmem:[%s22_s0] ss:$0 sm:$0xff] }
   0x2   :  { %5 = vst [vmem:[%s23_s1] sm:$0xff] %v4_v0 }

// kernel: tile.48
= control target key start
LH: loop header
LB: loop body
LE: loop exit
PB: predicated region body
PF: predicated region fallthrough
CT: control target
= control target key end

     0   :  { %s67_s10 = smov 28   ;;  %s68_s11 = smov 20   ;;  %vm3_vm0 = vcmask 31744   ;;  %vm9_vm1 = vcmask 261344   ;;  %vm15_vm2 = vcmask 228544   ;;  %vm21_vm3 = vcmask 195744   ;;  %s111_s0 = inlined_call_operand.vmem [shape: f32[8,4], index: 0, kind: input, shape index: {}]   ;;  %s112_s1 = inlined_call_operand.vmem [shape: f32[1,32], index: 1, kind: output, shape index: {}]  }
   0x1   :  { %v53_v0 = vld [vmem:[%s111_s0 + $0x7] sm:$0x1]   ;;  %v55_v1 = vld [vmem:[%s111_s0 + $0x5] sm:$0x1]   ;;  %v57_v2 = vld [vmem:[%s111_s0 + $0x3] sm:$0x1]  }
   0x2   :  { %7 = vrot.lane.b32.xlu0 %v53_v0, %s67_s10  ;;  %19 = vrot.lane.b32.xlu1 %v55_v1, %s68_s11  ;;  %s69_s14 = smov 12   ;;  %v54_v3 = vld [vmem:[%s111_s0 + $0x6] sm:$0x1]   ;;  %v56_v4 = vld [vmem:[%s111_s0 + $0x4] sm:$0x1]   ;;  %s70_s21 = smov 24  }
   0x3   :  { %31 = vrot.lane.b32.xlu2 %v57_v2, %s69_s14  ;;  %v58_v5 = vld [vmem:[%s111_s0 + $0x2] sm:$0x1]   ;;  %s71_s22 = smov 16   ;;  %s72_s23 = smov 8   ;;  %v59_v6 = vld [vmem:[%s111_s0 + $0x1] sm:$0x1]  }
   0x4   :  { %s73_s26 = smov 4   ;;  %v2_v7 = vld [vmem:[%s111_s0] sm:$0x1]   ;;  %vm27_vm4 = vcmask 162944   ;;  %vm33_vm5 = vcmask 130144   ;;  %vm39_vm6 = vcmask 97344  }
   0x5   :  { %4 = vst.msk [vmem:[#allocation0] sm:$0x1] %vm3_vm0, %v2_v7   ;;  %vm45_vm7 = vcmask 64544  }
   0xa   :  { %13 = vrot.lane.b32.xlu0 %v54_v3, %s70_s21  ;;  %25 = vrot.lane.b32.xlu1 %v56_v4, %s71_s22 }
   0xb   :  { %37 = vrot.lane.b32.xlu2 %v58_v5, %s72_s23 }
  0x12   :  { %43 = vrot.lane.b32.xlu0 %v59_v6, %s73_s26 }
  0x5d   :  { %v32_v8 = vpop.permute.xlu2 %31  }
  0x65   :  { %v38_v9 = vpop.permute.xlu2 %37  }
  0x74   :  { %v8_v10 = vpop.permute.xlu0 %7   ;;  %v20_v11 = vpop.permute.xlu1 %19  }
  0x75   :  { %10 = vst.msk [vmem:[#allocation0] sm:$0x1] %vm9_vm1, %v8_v10  }
  0x7c   :  { %v14_v12 = vpop.permute.xlu0 %13   ;;  %v26_v13 = vpop.permute.xlu1 %25  }
  0x7d   :  { %16 = vst.msk [vmem:[#allocation0] sm:$0x1] %vm15_vm2, %v14_v12  }
  0x7e   :  { %22 = vst.msk [vmem:[#allocation0] sm:$0x1] %vm21_vm3, %v20_v11  }
  0x7f   :  { %28 = vst.msk [vmem:[#allocation0] sm:$0x1] %vm27_vm4, %v26_v13  }
  0x80   :  { %34 = vst.msk [vmem:[#allocation0] sm:$0x1] %vm33_vm5, %v32_v8  }
  0x81   :  { %40 = vst.msk [vmem:[#allocation0] sm:$0x1] %vm39_vm6, %v38_v9  }
  0x84   :  { %v44_v14 = vpop.permute.xlu0 %43  }
  0x85   :  { %46 = vst.msk [vmem:[#allocation0] sm:$0x1] %vm45_vm7, %v44_v14  }
  0x8c   :  { %v49_v15 = vld [vmem:[#allocation0] sm:$0x1] }
  0x8d   :  { %52 = vst [vmem:[%s112_s1] sm:$0x1] %v49_v15 }

// kernel: conv_ffn_forward.1
= control target key start
LH: loop header
LB: loop body
LE: loop exit
PB: predicated region body
PF: predicated region fallthrough
CT: control target
= control target key end

     0   :  { %vm66_vm0 = vcmask 261120   ;;  %vm157_vm1 = vcmask 523264   ;;  %s2312_s1 = inlined_call_operand.vmem [shape: f32[32,64], index: 1, kind: input, shape index: {}]   ;;  %s2313_s2 = inlined_call_operand.vmem [shape: f32[1,64], index: 2, kind: input, shape index: {}]   ;;  %s2314_s0 = inlined_call_operand.vmem [shape: f32[32,32], index: 0, kind: input, shape index: {}]   ;;  %s2315_s8 = inlined_call_operand.vmem [shape: f32[32,32], index: 8, kind: input, shape index: {}]   ;;  %s2316_s5 = inlined_call_operand.vmem [shape: f32[3,64,64], index: 5, kind: input, shape index: {}]   ;;  %s2317_s3 = inlined_call_operand.vmem [shape: f32[32,64], index: 3, kind: input, shape index: {}]   ;;  %s2318_s4 = inlined_call_operand.vmem [shape: f32[32,64], index: 4, kind: input, shape index: {}]   ;;  %s2319_s7 = inlined_call_operand.vmem [shape: f32[2,32,32], index: 7, kind: input, shape index: {}]   ;;  %s2320_s6 = inlined_call_operand.vmem [shape: f32[1,64], index: 6, kind: input, shape index: {}]   ;;  %s2321_s12 = inlined_call_operand.vmem [shape: f32[1,32], index: 12, kind: input, shape index: {}]   ;;  %s2322_s11 = inlined_call_operand.vmem [shape: f32[64,32], index: 11, kind: input, shape index: {}]   ;;  %s2323_s9 = inlined_call_operand.vmem [shape: f32[32,64], index: 9, kind: input, shape index: {}]   ;;  %s2324_s10 = inlined_call_operand.vmem [shape: f32[32,64], index: 10, kind: input, shape index: {}]   ;;  %s2325_s13 = inlined_call_operand.vmem [shape: f32[32,32], index: 13, kind: input, shape index: {}]   ;;  %s2326_s14 = inlined_call_operand.vmem [shape: f32[32,32], index: 14, kind: input, shape index: {}]   ;;  %s2327_s15 = inlined_call_operand.vmem [shape: f32[32,32], index: 15, kind: output, shape index: {}]  }
   0x1   :  { %v61_v0 = vld [vmem:[%s2312_s1 + $0x18] sm:$0xff]  ;;  %v60_v1 = vld [vmem:[%s2312_s1 + $0x10] sm:$0xff]  ;;  %v59_v2 = vld [vmem:[%s2312_s1 + $0x8] sm:$0xff] }
   0x2   :  { %1472 = vmatpush.msra.mxu1 %v61_v0  ;;  %91 = vmatpush.msra.mxu0 %v61_v0  ;;  %v58_v3 = vld [vmem:[%s2312_s1] sm:$0xff]  ;;  %v56_v4 = vld [vmem:[%s2314_s0 + $0x10] sm:$0xff]  ;;  %v57_v6 = vld [vmem:[%s2314_s0 + $0x18] sm:$0xff] }
   0x3   :  { %v54_v5 = vld [vmem:[%s2314_s0] sm:$0xff]  ;;  %v55_v7 = vld [vmem:[%s2314_s0 + $0x8] sm:$0xff]  ;;  %v1707_v23 = vld [vmem:[%s2315_s8 + $0x10] sm:$0xff] }
   0x4   :  { %1473 = vmatpush.msra.mxu1 %v60_v1  ;;  %92 = vmatpush.msra.mxu0 %v60_v1  ;;  %v1476_v10 = vld [vmem:[%s2313_s2] ss:$0 sm:$0xff]  ;;  %v1698_v22 = vld [vmem:[%s2315_s8 + $0x8] sm:$0xff]  ;;  %v1716_v24 = vld [vmem:[%s2315_s8 + $0x18] sm:$0xff] }
   0x5   :  { %v1686_v20 = vld [vmem:[%s2315_s8] sm:$0xff]  ;;  %v458_v63 = vld [vmem:[%s2316_s5 + $0x38] sm:$0xff] }
   0x6   :  { %1474 = vmatpush.msra.mxu1 %v59_v2  ;;  %93 = vmatpush.msra.mxu0 %v59_v2  ;;  %v1423_v0 = vld [vmem:[%s2316_s5 + $0x78] sm:$0xff] }
   0x7   :  { %v1435_v1 = vld [vmem:[%s2316_s5 + $0xb8] sm:$0xff]  ;;  %479 = vmatpush.msra.mxu3 %v458_v63  ;;  %v109_v63 = vld [vmem:[%s2317_s3 + $0x8] sm:$0xff] }
   0x8   :  { %1475 = vmatpush.msra.mxu1 %v58_v3  ;;  %94 = vmatpush.msra.mxu0 %v58_v3 }
   0x9   :  { %1402 = vmatmul.msk.f32.vlgmr.msra.gmra.mxu1 %vm66_vm0, %v56_v4  ;;  %1400 = vmatmul.msk.f32.vlgmr.msra.gmra.mxu0 %vm66_vm0, %v54_v5  ;;  %v457_v4 = vld [vmem:[%s2316_s5 + $0x30] sm:$0xff] }
   0xa   :  { %517 = vmatpush.msrb.mxu0 %v1423_v0  ;;  %v1422_v5 = vld [vmem:[%s2316_s5 + $0x70] sm:$0xff]  ;;  %480 = vmatpush.msra.mxu3 %v457_v4 }
   0xc   :  { %518 = vmatpush.msrb.mxu0 %v1422_v5 }
  0x11   :  { %1403 = vmatmul.msk.f32.gmra.mxu1 %vm66_vm0, %v57_v6  ;;  %1401 = vmatmul.msk.f32.gmra.mxu0 %vm66_vm0, %v55_v7  ;;  %v1434_v6 = vld [vmem:[%s2316_s5 + $0xb0] sm:$0xff] }
  0x86   :  { %v102_v8 = vpop.f32.mrf.mxu1  ;;  %v96_v9 = vpop.f32.mrf.mxu0 }
  0x87   :  { %v1666_v13 = vadd.f32 %v1476_v10, %v102_v8  ;;  %v1675_v17 = vadd.f32 %v1476_v10, %v96_v9  ;;  %v456_v8 = vld [vmem:[%s2316_s5 + $0x28] sm:$0xff] }
  0x88   :  { %v1421_v9 = vld [vmem:[%s2316_s5 + $0x68] sm:$0xff]  ;;  %481 = vmatpush.msra.mxu3 %v456_v8 }
  0x89   :  { %v172_v18 = vmul.f32 %v1666_v13, %v1666_v13  ;;  %v170_v21 = vmul.f32 %v1675_v17, %v1675_v17  ;;  %519 = vmatpush.msrb.mxu0 %v1421_v9 }
  0x8e   :  { %v105_v11 = vpop.f32.mrf.mxu1  ;;  %v99_v12 = vpop.f32.mrf.mxu0 }
  0x8f   :  { %v1668_v14 = vadd.f32 %v1476_v10, %v105_v11  ;;  %v1670_v15 = vadd.f32 %v1476_v10, %v99_v12  ;;  %v1433_v11 = vld [vmem:[%s2316_s5 + $0xa8] sm:$0xff] }
  0x91   :  { %140 = vmatpush.msrb.mxu1 %v1668_v14  ;;  %v173_v16 = vmul.f32 %v1668_v14, %v1668_v14  ;;  %v171_v19 = vmul.f32 %v1670_v15, %v1670_v15 }
  0x93   :  { %141 = vmatpush.msrb.mxu1 %v1666_v13  ;;  %186 = vmatpush.msra.mxu2 %v173_v16 }
  0x95   :  { %142 = vmatpush.msrb.mxu1 %v1670_v15  ;;  %187 = vmatpush.msra.mxu2 %v172_v18 }
  0x97   :  { %143 = vmatpush.msrb.mxu1 %v1675_v17  ;;  %188 = vmatpush.msra.mxu2 %v171_v19  ;;  %v455_v19 = vld [vmem:[%s2316_s5 + $0x20] sm:$0xff] }
  0x98   :  { %1404 = vmatmul.msk.f32.vlgmr.msrb.gmra.mxu1 %vm66_vm0, %v1686_v20  ;;  %482 = vmatpush.msra.mxu3 %v455_v19  ;;  %v110_v19 = vld [vmem:[%s2317_s3 + $0x10] sm:$0xff] }
  0x99   :  { %189 = vmatpush.msra.mxu2 %v170_v21  ;;  %555 = vmatpush.msra.mxu1 %v1435_v1  ;;  %v1420_v21 = vld [vmem:[%s2316_s5 + $0x60] sm:$0xff]  ;;  %v113_v1 = vld [vmem:[%s2318_s4 + $0x8] sm:$0xff] }
  0x9a   :  { %1408 = vmatmul.msk.f32.vlgmr.msra.gmra.mxu2 %vm66_vm0, %v1686_v20  ;;  %520 = vmatpush.msrb.mxu0 %v1420_v21 }
  0x9b   :  { %556 = vmatpush.msra.mxu1 %v1434_v6 }
  0x9d   :  { %557 = vmatpush.msra.mxu1 %v1433_v11 }
  0xa0   :  { %1405 = vmatmul.msk.f32.gmra.mxu1 %vm66_vm0, %v1698_v22 }
  0xa2   :  { %1409 = vmatmul.msk.f32.gmra.mxu2 %vm66_vm0, %v1698_v22 }
  0xa8   :  { %1406 = vmatmul.msk.f32.gmra.mxu1 %vm66_vm0, %v1707_v23 }
  0xaa   :  { %1410 = vmatmul.msk.f32.gmra.mxu2 %vm66_vm0, %v1707_v23 }
  0xb0   :  { %1407 = vmatmul.msk.f32.gmra.mxu1 %vm66_vm0, %v1716_v24 }
  0xb2   :  { %1411 = vmatmul.msk.f32.gmra.mxu2 %vm66_vm0, %v1716_v24 }
 0x115   :  { %v145_v25 = vpop.f32.mrf.mxu1 }
 0x116   :  { %v158_v26 = vsel %vm157_vm1, %v145_v25, 0.0 }
 0x117   :  { %159 = vadd.xlane.f32.xlu0 %v158_v26 }
 0x11d   :  { %v148_v27 = vpop.f32.mrf.mxu1  ;;  %v191_v28 = vpop.f32.mrf.mxu2 }
 0x11e   :  { %v203_v29 = vsel %vm157_vm1, %v191_v28, 0.0  ;;  %v161_v30 = vsel %vm157_vm1, %v148_v27, 0.0  ;;  %v1432_v27 = vld [vmem:[%s2316_s5 + $0xa0] sm:$0xff] }
 0x11f   :  { %204 = vadd.xlane.f32.xlu0 %v203_v29  ;;  %162 = vadd.xlane.f32.xlu1 %v161_v30  ;;  %v454_v30 = vld [vmem:[%s2316_s5 + $0x18] sm:$0xff] }
 0x120   :  { %558 = vmatpush.msra.mxu1 %v1432_v27  ;;  %483 = vmatpush.msra.mxu3 %v454_v30 }
 0x125   :  { %v151_v31 = vpop.f32.mrf.mxu1  ;;  %v194_v32 = vpop.f32.mrf.mxu2 }
 0x126   :  { %v206_v33 = vsel %vm157_vm1, %v194_v32, 0.0  ;;  %v164_v34 = vsel %vm157_vm1, %v151_v31, 0.0  ;;  %v1419_v31 = vld [vmem:[%s2316_s5 + $0x58] sm:$0xff] }
 0x127   :  { %207 = vadd.xlane.f32.xlu1 %v206_v33  ;;  %165 = vadd.xlane.f32.xlu2 %v164_v34  ;;  %v1431_v34 = vld [vmem:[%s2316_s5 + $0x98] sm:$0xff] }
 0x128   :  { %521 = vmatpush.msrb.mxu0 %v1419_v31  ;;  %559 = vmatpush.msra.mxu1 %v1431_v34 }
 0x12d   :  { %v154_v35 = vpop.f32.mrf.mxu1  ;;  %v197_v36 = vpop.f32.mrf.mxu2 }
 0x12e   :  { %v209_v37 = vsel %vm157_vm1, %v197_v36, 0.0  ;;  %v167_v38 = vsel %vm157_vm1, %v154_v35, 0.0  ;;  %v108_v35 = vld [vmem:[%s2317_s3] sm:$0xff] }
 0x12f   :  { %210 = vadd.xlane.f32.xlu2 %v209_v37  ;;  %168 = vadd.xlane.f32.xlu0 %v167_v38  ;;  %v453_v38 = vld [vmem:[%s2316_s5 + $0x10] sm:$0xff] }
 0x130   :  { %484 = vmatpush.msra.mxu3 %v453_v38 }
 0x135   :  { %v200_v39 = vpop.f32.mrf.mxu2 }
 0x136   :  { %v212_v40 = vsel %vm157_vm1, %v200_v39, 0.0  ;;  %v1418_v39 = vld [vmem:[%s2316_s5 + $0x50] sm:$0xff] }
 0x137   :  { %213 = vadd.xlane.f32.xlu1 %v212_v40  ;;  %522 = vmatpush.msrb.mxu0 %v1418_v39 }
 0x18a   :  { %v160_v41 = vpop.xlane.xlu0 %159 }
 0x18b   :  { %v1730_v42 = vmul.f32 0.001953125, %v160_v41  ;;  %v1430_v41 = vld [vmem:[%s2316_s5 + $0x90] sm:$0xff] }
 0x18c   :  { %560 = vmatpush.msra.mxu1 %v1430_v41 }
 0x18d   :  { %v223_v45 = vmul.f32 %v1730_v42, %v1730_v42  ;;  %v231_v28 = vsub.f32 %v1675_v17, %v1730_v42  ;;  %v112_v42 = vld [vmem:[%s2318_s4] sm:$0xff] }
 0x192   :  { %v205_v43 = vpop.xlane.xlu0 %204  ;;  %v163_v44 = vpop.xlane.xlu1 %162 }
 0x193   :  { %v219_v46 = vmul.f32 0.001953125, %v205_v43  ;;  %v1734_v49 = vmul.f32 0.001953125, %v163_v44  ;;  %v452_v44 = vld [vmem:[%s2316_s5 + $0x8] sm:$0xff] }
 0x194   :  { %485 = vmatpush.msra.mxu3 %v452_v44 }
 0x195   :  { %v227_v47 = vsub.f32 %v219_v46, %v223_v45  ;;  %v224_v52 = vmul.f32 %v1734_v49, %v1734_v49  ;;  %v1417_v45 = vld [vmem:[%s2316_s5 + $0x48] sm:$0xff] }
 0x196   :  { %523 = vmatpush.msrb.mxu0 %v1417_v45 }
 0x197   :  { %v235_v48 = vadd.f32 1e-05, %v227_v47 }
 0x199   :  { %1479 = vrsqrt.f32 %v235_v48  ;;  %vm245_vm3 = vweird.f32 %v235_v48 }
 0x19a   :  { %v208_v50 = vpop.xlane.xlu1 %207  ;;  %v166_v51 = vpop.xlane.xlu2 %165 }
 0x19b   :  { %v220_v53 = vmul.f32 0.001953125, %v208_v50  ;;  %v1740_v57 = vmul.f32 0.001953125, %v166_v51 }
 0x19d   :  { %v228_v54 = vsub.f32 %v220_v53, %v224_v52  ;;  %v225_v61 = vmul.f32 %v1740_v57, %v1740_v57  ;;  %v451_v52 = vld [vmem:[%s2316_s5] sm:$0xff] }
 0x19e   :  { %v1416_v53 = vld [vmem:[%s2316_s5 + $0x40] sm:$0xff]  ;;  %486 = vmatpush.msra.mxu3 %v451_v52 }
 0x19f   :  { %v1480_v55 = vpop.eup %1479  ;;  %v1738_v56 = vadd.f32 1e-05, %v228_v54  ;;  %524 = vmatpush.msrb.mxu0 %v1416_v53 }
 0x1a0   :  { %v240_v58 = vmul.f32 %v1480_v55, %v235_v48  ;;  %vm246_vm2 = vweird.f32 %v1480_v55  ;;  %v1429_v48 = vld [vmem:[%s2316_s5 + $0x88] sm:$0xff] }
 0x1a1   :  { %1481 = vrsqrt.f32 %v1738_v56  ;;  %vm247_vm4 = vmor %vm245_vm3, %vm246_vm2  ;;  %vm255_vm6 = vweird.f32 %v1738_v56  ;;  %561 = vmatpush.msra.mxu1 %v1429_v48 }
 0x1a2   :  { %v241_v59 = vmul.f32 %v1480_v55, %v240_v58  ;;  %v211_v60 = vpop.xlane.xlu2 %210  ;;  %v169_v3 = vpop.xlane.xlu0 %168 }
 0x1a3   :  { %v221_v62 = vmul.f32 0.001953125, %v211_v60  ;;  %v1776_v18 = vmul.f32 0.001953125, %v169_v3  ;;  %v232_v60 = vsub.f32 %v1670_v15, %v1734_v49 }
 0x1a4   :  { %v242_v2 = vmul.f32 0.5, %v241_v59  ;;  %v1428_v59 = vld [vmem:[%s2316_s5 + $0x80] sm:$0xff] }
 0x1a5   :  { %v229_v7 = vsub.f32 %v221_v62, %v225_v61  ;;  %v226_v29 = vmul.f32 %v1776_v18, %v1776_v18  ;;  %562 = vmatpush.msra.mxu1 %v1428_v59 }
 0x1a6   :  { %v243_v10 = vsub.f32 1.5, %v242_v2 }
 0x1a7   :  { %v1772_v12 = vpop.eup %1481  ;;  %v1774_v16 = vadd.f32 1e-05, %v229_v7 }
 0x1a8   :  { %v244_v25 = vmul.f32 %v1480_v55, %v243_v10  ;;  %v250_v26 = vmul.f32 %v1772_v12, %v1738_v56  ;;  %vm256_vm5 = vweird.f32 %v1772_v12  ;;  %v233_v10 = vsub.f32 %v1666_v13, %v1740_v57 }
 0x1a9   :  { %1483 = vrsqrt.f32 %v1774_v16  ;;  %vm257_vm7 = vmor %vm255_vm6, %vm256_vm5  ;;  %vm265_vm9 = vweird.f32 %v1774_v16 }
 0x1aa   :  { %v248_v32 = vsel %vm247_vm4, %v1480_v55, %v244_v25  ;;  %v251_v33 = vmul.f32 %v1772_v12, %v250_v26  ;;  %v214_v17 = vpop.xlane.xlu1 %213 }
 0x1ab   :  { %v279_v36 = vmul.f32 %v248_v32, %v231_v28  ;;  %v222_v37 = vmul.f32 0.001953125, %v214_v17 }
 0x1ac   :  { %v252_v40 = vmul.f32 0.5, %v251_v33  ;;  %v234_v33 = vsub.f32 %v1668_v14, %v1776_v18  ;;  %v115_v14 = vld [vmem:[%s2318_s4 + $0x18] sm:$0xff] }
 0x1ad   :  { %v230_v43 = vsub.f32 %v222_v37, %v226_v29  ;;  %v283_v46 = vmul.f32 %v279_v36, %v108_v35  ;;  %v111_v37 = vld [vmem:[%s2317_s3 + $0x18] sm:$0xff] }
 0x1ae   :  { %v253_v47 = vsub.f32 1.5, %v252_v40 }
 0x1af   :  { %v1484_v50 = vpop.eup %1483  ;;  %v238_v51 = vadd.f32 1e-05, %v230_v43  ;;  %v1836_v54 = vadd.f32 %v283_v46, %v112_v42 }
 0x1b0   :  { %v254_v55 = vmul.f32 %v1772_v12, %v253_v47  ;;  %v260_v58 = vmul.f32 %v1484_v50, %v1774_v16  ;;  %vm266_vm8 = vweird.f32 %v1484_v50  ;;  %v114_v16 = vld [vmem:[%s2318_s4 + $0x10] sm:$0xff] }
 0x1b1   :  { %1485 = vrsqrt.f32 %v238_v51  ;;  %v1849_v61 = vmul.f32 0.70710677, %v1836_v54  ;;  %vm267_vm10 = vmor %vm265_vm9, %vm266_vm8  ;;  %vm275_vm12 = vweird.f32 %v238_v51 }
 0x1b2   :  { %v258_v56 = vsel %vm257_vm7, %v1772_v12, %v254_v55  ;;  %v261_v62 = vmul.f32 %v1484_v50, %v260_v58 }
 0x1b3   :  { %v280_v0 = vmul.f32 %v258_v56, %v232_v60  ;;  %v1856_v15 = vand.u32 2147483647, %v1849_v61 }
 0x1b4   :  { %v262_v49 = vmul.f32 0.5, %v261_v62 }
 0x1b5   :  { %v303_v2 = vmul.f32 0.3275911, %v1856_v15  ;;  %v284_v3 = vmul.f32 %v280_v0, %v109_v63  ;;  %v407_v52 = vsub.f32 0.0, %v1856_v15 }
 0x1b6   :  { %v263_v4 = vsub.f32 1.5, %v262_v49 }
 0x1b7   :  { %v1486_v5 = vpop.eup %1485  ;;  %v307_v6 = vadd.f32 1.0, %v303_v2  ;;  %v1862_v7 = vadd.f32 %v284_v3, %v113_v1  ;;  %v411_v62 = vmul.f32 %v407_v52, %v1856_v15 }
 0x1b8   :  { %v264_v8 = vmul.f32 %v1484_v50, %v263_v4  ;;  %v270_v9 = vmul.f32 %v1486_v5, %v238_v51  ;;  %vm276_vm11 = vweird.f32 %v1486_v5 }
 0x1b9   :  { %1487 = vrcp.f32 %v307_v6  ;;  %v1871_v25 = vmul.f32 0.70710677, %v1862_v7  ;;  %vm277_vm13 = vmor %vm275_vm12, %vm276_vm11  ;;  %v322_v39 = vand.u32 2147483648, %v307_v6  ;;  %v320_v41 = vand.u32 2147483647, %v307_v6 }
 0x1ba   :  { %v268_v11 = vsel %vm267_vm10, %v1484_v50, %v264_v8  ;;  %v271_v12 = vmul.f32 %v1486_v5, %v270_v9  ;;  %vm316_vm15 = vweird.f32 %v307_v6  ;;  %v415_v8 = vmul.f32 1.442695, %v411_v62 }
 0x1bb   :  { %v281_v21 = vmul.f32 %v268_v11, %v233_v10  ;;  %v1877_v27 = vand.u32 2147483647, %v1871_v25  ;;  %v323_v45 = vor.u32 1.1754944e-38, %v322_v39  ;;  %vm321_vm3 = vcmp.eq.f32.partialorder %v320_v41, 8.507059e+37 }
 0x1bc   :  { %v272_v26 = vmul.f32 0.5, %v271_v12 }
 0x1bd   :  { %v285_v13 = vmul.f32 %v281_v21, %v110_v19  ;;  %v304_v29 = vmul.f32 0.3275911, %v1877_v27  ;;  %v408_v19 = vsub.f32 0.0, %v1877_v27 }
 0x1be   :  { %v273_v57 = vsub.f32 1.5, %v272_v26 }
 0x1bf   :  { %v1488_v28 = vpop.eup %1487  ;;  %v1880_v30 = vadd.f32 %v285_v13, %v114_v16  ;;  %v308_v17 = vadd.f32 1.0, %v304_v29 }
 0x1c0   :  { %v274_v31 = vmul.f32 %v1486_v5, %v273_v57  ;;  %v312_v32 = vmul.f32 %v1488_v28, %v307_v6  ;;  %vm317_vm14 = vweird.f32 %v1488_v28 }
 0x1c1   :  { %v1885_v34 = vmul.f32 0.70710677, %v1880_v30  ;;  %1489 = vrcp.f32 %v308_v17  ;;  %vm318_vm2 = vmor %vm316_vm15, %vm317_vm14  ;;  %v335_v63 = vand.u32 2147483647, %v308_v17  ;;  %v337_v0 = vand.u32 2147483648, %v308_v17 }
 0x1c2   :  { %v278_v35 = vsel %vm277_vm13, %v1486_v5, %v274_v31  ;;  %v313_v36 = vsub.f32 1.0, %v312_v32  ;;  %vm331_vm5 = vweird.f32 %v308_v17  ;;  %v412_v32 = vmul.f32 %v408_v19, %v1877_v27 }
 0x1c3   :  { %v282_v38 = vmul.f32 %v278_v35, %v234_v33  ;;  %v1891_v42 = vand.u32 2147483647, %v1885_v34  ;;  %v338_v9 = vor.u32 1.1754944e-38, %v337_v0  ;;  %vm336_vm7 = vcmp.eq.f32.partialorder %v335_v63, 8.507059e+37 }
 0x1c4   :  { %v314_v40 = vmul.f32 %v1488_v28, %v313_v36  ;;  %vm431_vm14 = vcmp.ge.f32.partialorder %v1849_v61, 0.0 }
 0x1c5   :  { %v286_v18 = vmul.f32 %v282_v38, %v111_v37  ;;  %v305_v44 = vmul.f32 0.3275911, %v1891_v42  ;;  %v409_v38 = vsub.f32 0.0, %v1891_v42 }
 0x1c6   :  { %v315_v43 = vadd.f32 %v1488_v28, %v314_v40 }
 0x1c7   :  { %v1897_v46 = vadd.f32 %v286_v18, %v115_v14  ;;  %v309_v48 = vadd.f32 1.0, %v305_v44  ;;  %v1490_v50 = vpop.eup %1489  ;;  %v417_v44 = vmul.f32 1.442695, %v412_v32 }
 0x1c8   :  { %v319_v47 = vsel %vm318_vm2, %v1488_v28, %v315_v43  ;;  %v327_v58 = vmul.f32 %v1490_v50, %v308_v17  ;;  %vm332_vm4 = vweird.f32 %v1490_v50 }
 0x1c9   :  { %v324_v51 = vsel %vm321_vm3, %v323_v45, %v319_v47  ;;  %v1901_v53 = vmul.f32 0.70710677, %v1897_v46  ;;  %1491 = vrcp.f32 %v309_v48  ;;  %vm333_vm6 = vmor %vm331_vm5, %vm332_vm4  ;;  %v352_v13 = vand.u32 2147483648, %v309_v48 }
 0x1ca   :  { %v371_v55 = vmul.f32 1.0614054, %v324_v51  ;;  %v328_v60 = vsub.f32 1.0, %v327_v58  ;;  %v350_v28 = vand.u32 2147483647, %v309_v48  ;;  %vm346_vm9 = vweird.f32 %v309_v48 }
 0x1cb   :  { %v1904_v56 = vand.u32 2147483647, %v1901_v53  ;;  %v353_v37 = vor.u32 1.1754944e-38, %v352_v13  ;;  %vm432_vm3 = vcmp.ge.f32.partialorder %v1871_v25, 0.0  ;;  %vm433_vm4 = vcmp.ge.f32.partialorder %v1885_v34, 0.0 }
 0x1cc   :  { %v375_v59 = vadd.f32 -1.4531521, %v371_v55  ;;  %v329_v1 = vmul.f32 %v1490_v50, %v328_v60  ;;  %vm351_vm11 = vcmp.eq.f32.partialorder %v350_v28, 8.507059e+37  ;;  %vm434_vm5 = vcmp.ge.f32.partialorder %v1901_v53, 0.0 }
 0x1cd   :  { %v306_v2 = vmul.f32 0.3275911, %v1904_v56  ;;  %v294_v34 = vmul.f32 0.5, %v1897_v46  ;;  %v1444_v46 = vld [vmem:[%s2319_s7 + $0x20] sm:$0xff] }
 0x1ce   :  { %v379_v49 = vmul.f32 %v375_v59, %v324_v51  ;;  %v330_v5 = vadd.f32 %v1490_v50, %v329_v1 }
 0x1cf   :  { %v1492_v3 = vpop.eup %1491  ;;  %v1908_v6 = vadd.f32 1.0, %v306_v2 }
 0x1d0   :  { %v383_v4 = vadd.f32 1.4214138, %v379_v49  ;;  %v342_v10 = vmul.f32 %v1492_v3, %v309_v48  ;;  %v334_v12 = vsel %vm333_vm6, %v1490_v50, %v330_v5  ;;  %vm347_vm8 = vweird.f32 %v1492_v3 }
 0x1d1   :  { %1493 = vrcp.f32 %v1908_v6  ;;  %v339_v15 = vsel %vm336_vm7, %v338_v9, %v334_v12  ;;  %vm348_vm10 = vmor %vm346_vm9, %vm347_vm8  ;;  %v413_v50 = vmul.f32 %v409_v38, %v1891_v42  ;;  %v367_v52 = vand.u32 2147483648, %v1908_v6 }
 0x1d2   :  { %v387_v11 = vmul.f32 %v383_v4, %v324_v51  ;;  %v343_v21 = vsub.f32 1.0, %v342_v10  ;;  %v372_v16 = vmul.f32 1.0614054, %v339_v15  ;;  %1495 = vpow2.f32 %v415_v8 }
 0x1d3   :  { %v365_v59 = vand.u32 2147483647, %v1908_v6  ;;  %1497 = vpow2.f32 %v417_v44  ;;  %vm361_vm13 = vweird.f32 %v1908_v6  ;;  %v368_v42 = vor.u32 1.1754944e-38, %v367_v52 }
 0x1d4   :  { %v391_v26 = vadd.f32 -0.28449672, %v387_v11  ;;  %v344_v57 = vmul.f32 %v1492_v3, %v343_v21  ;;  %v376_v31 = vadd.f32 -1.4531521, %v372_v16  ;;  %v419_v2 = vmul.f32 1.442695, %v413_v50 }
 0x1d5   :  { %vm366_vm2 = vcmp.eq.f32.partialorder %v365_v59, 8.507059e+37  ;;  %v410_v9 = vsub.f32 0.0, %v1904_v56  ;;  %v291_v10 = vmul.f32 0.5, %v1836_v54 }
 0x1d6   :  { %v395_v29 = vmul.f32 %v391_v26, %v324_v51  ;;  %v345_v33 = vadd.f32 %v1492_v3, %v344_v57  ;;  %v380_v36 = vmul.f32 %v376_v31, %v339_v15  ;;  %1499 = vpow2.f32 %v419_v2  ;;  %v1445_v2 = vld [vmem:[%s2319_s7 + $0x28] sm:$0xff] }
 0x1d7   :  { %v1494_v17 = vpop.eup %1493  ;;  %v414_v57 = vmul.f32 %v410_v9, %v1904_v56  ;;  %v292_v56 = vmul.f32 0.5, %v1862_v7  ;;  %v579_v9 = vld [vmem:[%s2319_s7 + $0x18] sm:$0xff] }
 0x1d8   :  { %v399_v35 = vadd.f32 0.2548296, %v395_v29  ;;  %v349_v39 = vsel %vm348_vm10, %v1492_v3, %v345_v33  ;;  %v357_v40 = vmul.f32 %v1494_v17, %v1908_v6  ;;  %v384_v14 = vadd.f32 1.4214138, %v380_v36  ;;  %v1496_v43 = vpop.eup %1495 }
 0x1d9   :  { %v354_v18 = vsel %vm351_vm11, %v353_v37, %v349_v39  ;;  %vm362_vm12 = vweird.f32 %v1494_v17  ;;  %v1498_v61 = vpop.eup %1497  ;;  %v421_v33 = vmul.f32 1.442695, %v414_v57 }
 0x1da   :  { %v403_v41 = vmul.f32 %v399_v35, %v324_v51  ;;  %v373_v45 = vmul.f32 1.0614054, %v354_v18  ;;  %v358_v27 = vsub.f32 1.0, %v357_v40  ;;  %v388_v48 = vmul.f32 %v384_v14, %v339_v15  ;;  %vm363_vm15 = vmor %vm361_vm13, %vm362_vm12 }
 0x1db   :  { %1501 = vpow2.f32 %v421_v33  ;;  %v1477_v33 = vld [vmem:[%s2320_s6] ss:$0 sm:$0xff] }
 0x1dc   :  { %v423_v47 = vmul.f32 %v1496_v43, %v403_v41  ;;  %v377_v55 = vadd.f32 -1.4531521, %v373_v45  ;;  %v359_v58 = vmul.f32 %v1494_v17, %v358_v27  ;;  %v392_v62 = vadd.f32 -0.28449672, %v388_v48  ;;  %v1500_v36 = vpop.eup %1499 }
 0x1dd   :  { %v293_v27 = vmul.f32 0.5, %v1880_v30 }
 0x1de   :  { %v427_v60 = vsub.f32 1.0, %v423_v47  ;;  %v381_v51 = vmul.f32 %v377_v55, %v354_v18  ;;  %v360_v63 = vadd.f32 %v1494_v17, %v359_v58  ;;  %v396_v49 = vmul.f32 %v392_v62, %v339_v15 }
 0x1e0   :  { %v435_v0 = vsub.f32 0.0, %v427_v60  ;;  %v385_v1 = vadd.f32 1.4214138, %v381_v51  ;;  %v364_v3 = vsel %vm363_vm15, %v1494_v17, %v360_v63  ;;  %v400_v5 = vadd.f32 0.2548296, %v396_v49 }
 0x1e1   :  { %v369_v8 = vsel %vm366_vm2, %v368_v42, %v364_v3  ;;  %v1502_v7 = vpop.eup %1501  ;;  %v577_v3 = vld [vmem:[%s2319_s7 + $0x8] sm:$0xff] }
 0x1e2   :  { %v439_v4 = vsel %vm431_vm14, %v427_v60, %v435_v0  ;;  %v389_v12 = vmul.f32 %v385_v1, %v354_v18  ;;  %v374_v6 = vmul.f32 1.0614054, %v369_v8  ;;  %v404_v19 = vmul.f32 %v400_v5, %v339_v15  ;;  %v576_v1 = vld [vmem:[%s2319_s7] sm:$0xff]  ;;  %v578_v5 = vld [vmem:[%s2319_s7 + $0x10] sm:$0xff] }
 0x1e3   :  { %v443_v11 = vadd.f32 1.0, %v439_v4  ;;  %v1446_v4 = vld [vmem:[%s2319_s7 + $0x30] sm:$0xff] }
 0x1e4   :  { %v393_v26 = vadd.f32 -0.28449672, %v389_v12  ;;  %v378_v16 = vadd.f32 -1.4531521, %v374_v6  ;;  %v424_v13 = vmul.f32 %v1498_v61, %v404_v19 }
 0x1e5   :  { %v447_v21 = vmul.f32 %v443_v11, %v291_v10 }
 0x1e6   :  { %v397_v28 = vmul.f32 %v393_v26, %v354_v18  ;;  %v382_v29 = vmul.f32 %v378_v16, %v369_v8  ;;  %v428_v54 = vsub.f32 1.0, %v424_v13 }
 0x1e7   :  { %1412 = vmatmul.msk.f32.vlgmr.msra.gmra.mxu3 %vm157_vm1, %v447_v21  ;;  %1424 = vmatmul.msk.f32.vlgmr.msrb.gmra.mxu0 %vm157_vm1, %v447_v21 }
 0x1e8   :  { %1436 = vmatmul.msk.f32.vlgmr.msra.gmra.mxu1 %vm157_vm1, %v447_v21  ;;  %v401_v31 = vadd.f32 0.2548296, %v397_v28  ;;  %v386_v32 = vadd.f32 1.4214138, %v382_v29  ;;  %v436_v15 = vsub.f32 0.0, %v428_v54 }
 0x1ea   :  { %v405_v17 = vmul.f32 %v401_v31, %v354_v18  ;;  %v390_v35 = vmul.f32 %v386_v32, %v369_v8  ;;  %v440_v37 = vsel %vm432_vm3, %v428_v54, %v436_v15 }
 0x1eb   :  { %v444_v38 = vadd.f32 1.0, %v440_v37 }
 0x1ec   :  { %v425_v39 = vmul.f32 %v1500_v36, %v405_v17  ;;  %v394_v40 = vadd.f32 -0.28449672, %v390_v35 }
 0x1ed   :  { %v448_v41 = vmul.f32 %v444_v38, %v292_v56 }
 0x1ee   :  { %v429_v14 = vsub.f32 1.0, %v425_v39  ;;  %v398_v43 = vmul.f32 %v394_v40, %v369_v8 }
 0x1ef   :  { %1413 = vmatmul.msk.f32.gmra.mxu3 %vm157_vm1, %v448_v41  ;;  %1425 = vmatmul.msk.f32.gmra.mxu0 %vm157_vm1, %v448_v41 }
 0x1f0   :  { %v437_v44 = vsub.f32 0.0, %v429_v14  ;;  %v402_v45 = vadd.f32 0.2548296, %v398_v43  ;;  %1437 = vmatmul.msk.f32.gmra.mxu1 %vm157_vm1, %v448_v41 }
 0x1f2   :  { %v441_v25 = vsel %vm433_vm4, %v429_v14, %v437_v44  ;;  %v406_v18 = vmul.f32 %v402_v45, %v369_v8  ;;  %v1447_v8 = vld [vmem:[%s2319_s7 + $0x38] sm:$0xff] }
 0x1f3   :  { %v445_v47 = vadd.f32 1.0, %v441_v25 }
 0x1f4   :  { %v426_v48 = vmul.f32 %v1502_v7, %v406_v18 }
 0x1f5   :  { %v449_v50 = vmul.f32 %v445_v47, %v293_v27 }
 0x1f6   :  { %v430_v52 = vsub.f32 1.0, %v426_v48 }
 0x1f7   :  { %1414 = vmatmul.msk.f32.gmra.mxu3 %vm157_vm1, %v449_v50  ;;  %1426 = vmatmul.msk.f32.gmra.mxu0 %vm157_vm1, %v449_v50 }
 0x1f8   :  { %v438_v55 = vsub.f32 0.0, %v430_v52  ;;  %1438 = vmatmul.msk.f32.gmra.mxu1 %vm157_vm1, %v449_v50 }
 0x1fa   :  { %v442_v58 = vsel %vm434_vm5, %v430_v52, %v438_v55 }
 0x1fb   :  { %v446_v59 = vadd.f32 1.0, %v442_v58 }
 0x1fd   :  { %v450_v60 = vmul.f32 %v446_v59, %v294_v34 }
 0x1ff   :  { %1415 = vmatmul.msk.f32.gmra.mxu3 %vm157_vm1, %v450_v60  ;;  %1427 = vmatmul.msk.f32.gmra.mxu0 %vm157_vm1, %v450_v60 }
 0x200   :  { %1439 = vmatmul.msk.f32.gmra.mxu1 %vm157_vm1, %v450_v60 }
 0x264   :  { %v526_v10 = vpop.f32.mrf.mxu0 }
 0x265   :  { %v564_v30 = vpop.f32.mrf.mxu1 }
 0x26a   :  { %v488_v62 = vpop.f32.mrf.mxu3 }
 0x26c   :  { %v529_v6 = vpop.f32.mrf.mxu0 }
 0x26d   :  { %v567_v51 = vpop.f32.mrf.mxu1 }
 0x272   :  { %v491_v63 = vpop.f32.mrf.mxu3 }
 0x274   :  { %v532_v21 = vpop.f32.mrf.mxu0 }
 0x275   :  { %v570_v0 = vpop.f32.mrf.mxu1 }
 0x27a   :  { %v494_v49 = vpop.f32.mrf.mxu3 }
 0x27c   :  { %v535_v57 = vpop.f32.mrf.mxu0 }
 0x27d   :  { %v573_v42 = vpop.f32.mrf.mxu1 }
 0x27e   :  { %650 = vmatpush.msrb.mxu3 %v573_v42 }
 0x280   :  { %651 = vmatpush.msrb.mxu3 %v570_v0 }
 0x282   :  { %652 = vmatpush.msrb.mxu3 %v567_v51  ;;  %v497_v53 = vpop.f32.mrf.mxu3 }
 0x283   :  { %604 = vmatpush.msrb.mxu2 %v497_v53 }
 0x284   :  { %653 = vmatpush.msrb.mxu3 %v564_v30 }
 0x285   :  { %605 = vmatpush.msrb.mxu2 %v494_v49  ;;  %1448 = vmatmul.msk.f32.vlgmr.msrb.gmra.mxu3 %vm66_vm0, %v1444_v46 }
 0x287   :  { %606 = vmatpush.msrb.mxu2 %v491_v63 }
 0x289   :  { %607 = vmatpush.msrb.mxu2 %v488_v62 }
 0x28a   :  { %1440 = vmatmul.msk.f32.vlgmr.msrb.gmra.mxu2 %vm66_vm0, %v576_v1 }
 0x28d   :  { %1449 = vmatmul.msk.f32.gmra.mxu3 %vm66_vm0, %v1445_v2 }
 0x292   :  { %1441 = vmatmul.msk.f32.gmra.mxu2 %vm66_vm0, %v577_v3 }
 0x295   :  { %1450 = vmatmul.msk.f32.gmra.mxu3 %vm66_vm0, %v1446_v4 }
 0x29a   :  { %1442 = vmatmul.msk.f32.gmra.mxu2 %vm66_vm0, %v578_v5 }
 0x29d   :  { %1451 = vmatmul.msk.f32.gmra.mxu3 %vm66_vm0, %v1447_v8 }
 0x2a2   :  { %1443 = vmatmul.msk.f32.gmra.mxu2 %vm66_vm0, %v579_v9 }
 0x308   :  { %v655_v11 = vpop.f32.mrf.mxu3 }
 0x30d   :  { %v609_v12 = vpop.f32.mrf.mxu2 }
 0x30e   :  { %v610_v31 = vadd.f32 %v609_v12, %v526_v10 }
 0x310   :  { %v658_v19 = vpop.f32.mrf.mxu3  ;;  %v667_v36 = vadd.f32 %v655_v11, %v610_v31 }
 0x312   :  { %v1985_v40 = vadd.f32 %v1477_v33, %v667_v36 }
 0x314   :  { %v728_v43 = vmul.f32 %v1985_v40, %v1985_v40 }
 0x315   :  { %v612_v61 = vpop.f32.mrf.mxu2 }
 0x316   :  { %v613_v28 = vadd.f32 %v612_v61, %v529_v6  ;;  %v1016_v6 = vld [vmem:[%s2322_s11 + $0x38] sm:$0xff] }
 0x317   :  { %1041 = vmatpush.msra.mxu2 %v1016_v6 }
 0x318   :  { %v661_v26 = vpop.f32.mrf.mxu3  ;;  %v668_v17 = vadd.f32 %v658_v19, %v613_v28  ;;  %v1015_v19 = vld [vmem:[%s2322_s11 + $0x30] sm:$0xff]  ;;  %v1013_v28 = vld [vmem:[%s2322_s11 + $0x20] sm:$0xff] }
 0x319   :  { %1042 = vmatpush.msra.mxu2 %v1015_v19 }
 0x31a   :  { %v1980_v38 = vadd.f32 %v1477_v33, %v668_v17  ;;  %v679_v17 = vld [vmem:[%s2323_s9] sm:$0xff] }
 0x31c   :  { %v729_v14 = vmul.f32 %v1980_v38, %v1980_v38 }
 0x31d   :  { %v615_v16 = vpop.f32.mrf.mxu2 }
 0x31e   :  { %v616_v13 = vadd.f32 %v615_v16, %v532_v21 }
 0x320   :  { %v664_v54 = vpop.f32.mrf.mxu3  ;;  %v669_v32 = vadd.f32 %v661_v26, %v616_v13  ;;  %v1014_v26 = vld [vmem:[%s2322_s11 + $0x28] sm:$0xff] }
 0x321   :  { %1043 = vmatpush.msra.mxu2 %v1014_v26 }
 0x322   :  { %v1976_v37 = vadd.f32 %v1477_v33, %v669_v32 }
 0x323   :  { %1044 = vmatpush.msra.mxu2 %v1013_v28 }
 0x324   :  { %v730_v41 = vmul.f32 %v1976_v37, %v1976_v37 }
 0x325   :  { %v618_v29 = vpop.f32.mrf.mxu2 }
 0x326   :  { %v619_v15 = vadd.f32 %v618_v29, %v535_v57 }
 0x328   :  { %v670_v35 = vadd.f32 %v664_v54, %v619_v15 }
 0x32a   :  { %v1978_v56 = vadd.f32 %v1477_v33, %v670_v35  ;;  %v1012_v33 = vld [vmem:[%s2322_s11 + $0x18] sm:$0xff] }
 0x32b   :  { %1045 = vmatpush.msra.mxu2 %v1012_v33 }
 0x32c   :  { %v731_v39 = vmul.f32 %v1978_v56, %v1978_v56  ;;  %699 = vmatpush.msra.mxu0 %v1978_v56 }
 0x32e   :  { %700 = vmatpush.msra.mxu0 %v1976_v37  ;;  %744 = vmatpush.msrb.mxu1 %v731_v39 }
 0x330   :  { %701 = vmatpush.msra.mxu0 %v1980_v38  ;;  %745 = vmatpush.msrb.mxu1 %v730_v41 }
 0x332   :  { %702 = vmatpush.msra.mxu0 %v1985_v40  ;;  %746 = vmatpush.msrb.mxu1 %v729_v14 }
 0x333   :  { %1452 = vmatmul.msk.f32.vlgmr.msra.gmra.mxu0 %vm66_vm0, %v1686_v20 }
 0x334   :  { %747 = vmatpush.msrb.mxu1 %v728_v43  ;;  %v1011_v43 = vld [vmem:[%s2322_s11 + $0x10] sm:$0xff] }
 0x335   :  { %1456 = vmatmul.msk.f32.vlgmr.msrb.gmra.mxu1 %vm66_vm0, %v1686_v20  ;;  %1046 = vmatpush.msra.mxu2 %v1011_v43 }
 0x33b   :  { %1453 = vmatmul.msk.f32.gmra.mxu0 %vm66_vm0, %v1698_v22 }
 0x33d   :  { %1457 = vmatmul.msk.f32.gmra.mxu1 %vm66_vm0, %v1698_v22 }
 0x343   :  { %1454 = vmatmul.msk.f32.gmra.mxu0 %vm66_vm0, %v1707_v23 }
 0x345   :  { %1458 = vmatmul.msk.f32.gmra.mxu1 %vm66_vm0, %v1707_v23 }
 0x34b   :  { %1455 = vmatmul.msk.f32.gmra.mxu0 %vm66_vm0, %v1716_v24 }
 0x34d   :  { %1459 = vmatmul.msk.f32.gmra.mxu1 %vm66_vm0, %v1716_v24 }
 0x3b0   :  { %v704_v44 = vpop.f32.mrf.mxu0 }
 0x3b1   :  { %v716_v20 = vsel %vm157_vm1, %v704_v44, 0.0  ;;  %v683_v44 = vld [vmem:[%s2324_s10] sm:$0xff] }
 0x3b2   :  { %v749_v45 = vpop.f32.mrf.mxu1  ;;  %717 = vadd.xlane.f32.xlu2 %v716_v20 }
 0x3b3   :  { %v761_v25 = vsel %vm157_vm1, %v749_v45, 0.0 }
 0x3b4   :  { %762 = vadd.xlane.f32.xlu0 %v761_v25 }
 0x3b8   :  { %v707_v22 = vpop.f32.mrf.mxu0 }
 0x3b9   :  { %v719_v18 = vsel %vm157_vm1, %v707_v22, 0.0  ;;  %v1010_v22 = vld [vmem:[%s2322_s11 + $0x8] sm:$0xff] }
 0x3ba   :  { %v752_v7 = vpop.f32.mrf.mxu1  ;;  %720 = vadd.xlane.f32.xlu1 %v719_v18  ;;  %1047 = vmatpush.msra.mxu2 %v1010_v22 }
 0x3bb   :  { %v764_v23 = vsel %vm157_vm1, %v752_v7, 0.0 }
 0x3bc   :  { %765 = vadd.xlane.f32.xlu2 %v764_v23 }
 0x3c0   :  { %v710_v27 = vpop.f32.mrf.mxu0 }
 0x3c1   :  { %v722_v47 = vsel %vm157_vm1, %v710_v27, 0.0 }
 0x3c2   :  { %v755_v24 = vpop.f32.mrf.mxu1  ;;  %723 = vadd.xlane.f32.xlu0 %v722_v47  ;;  %v1009_v47 = vld [vmem:[%s2322_s11] sm:$0xff] }
 0x3c3   :  { %v767_v48 = vsel %vm157_vm1, %v755_v24, 0.0  ;;  %1048 = vmatpush.msra.mxu2 %v1009_v47 }
 0x3c4   :  { %768 = vadd.xlane.f32.xlu1 %v767_v48 }
 0x3c8   :  { %v713_v50 = vpop.f32.mrf.mxu0 }
 0x3c9   :  { %v725_v52 = vsel %vm157_vm1, %v713_v50, 0.0 }
 0x3ca   :  { %v758_v55 = vpop.f32.mrf.mxu1  ;;  %726 = vadd.xlane.f32.xlu2 %v725_v52 }
 0x3cb   :  { %v770_v58 = vsel %vm157_vm1, %v758_v55, 0.0 }
 0x3cc   :  { %771 = vadd.xlane.f32.xlu0 %v770_v58 }
 0x425   :  { %v718_v34 = vpop.xlane.xlu2 %717 }
 0x426   :  { %v773_v59 = vmul.f32 0.001953125, %v718_v34  ;;  %v680_v34 = vld [vmem:[%s2323_s9 + $0x8] sm:$0xff] }
 0x427   :  { %v763_v60 = vpop.xlane.xlu0 %762 }
 0x428   :  { %v781_v30 = vmul.f32 %v773_v59, %v773_v59  ;;  %v777_v62 = vmul.f32 0.001953125, %v763_v60  ;;  %v789_v32 = vsub.f32 %v1985_v40, %v773_v59 }
 0x42a   :  { %v785_v51 = vsub.f32 %v777_v62, %v781_v30  ;;  %v684_v62 = vld [vmem:[%s2324_s10 + $0x8] sm:$0xff] }
 0x42c   :  { %v793_v63 = vadd.f32 1e-05, %v785_v51 }
 0x42d   :  { %v721_v0 = vpop.xlane.xlu1 %720 }
 0x42e   :  { %1503 = vrsqrt.f32 %v793_v63  ;;  %v2020_v49 = vmul.f32 0.001953125, %v721_v0  ;;  %vm803_vm7 = vweird.f32 %v793_v63 }
 0x42f   :  { %v766_v42 = vpop.xlane.xlu2 %765 }
 0x430   :  { %v782_v53 = vmul.f32 %v2020_v49, %v2020_v49  ;;  %v778_v46 = vmul.f32 0.001953125, %v766_v42  ;;  %v790_v52 = vsub.f32 %v1980_v38, %v2020_v49 }
 0x432   :  { %v786_v1 = vsub.f32 %v778_v46, %v782_v53 }
 0x434   :  { %v1504_v2 = vpop.eup %1503  ;;  %v794_v3 = vadd.f32 1e-05, %v786_v1 }
 0x435   :  { %v798_v4 = vmul.f32 %v1504_v2, %v793_v63  ;;  %v724_v5 = vpop.xlane.xlu0 %723  ;;  %vm804_vm6 = vweird.f32 %v1504_v2 }
 0x436   :  { %1505 = vrsqrt.f32 %v794_v3  ;;  %v2024_v8 = vmul.f32 0.001953125, %v724_v5  ;;  %vm805_vm8 = vmor %vm803_vm7, %vm804_vm6  ;;  %vm813_vm10 = vweird.f32 %v794_v3 }
 0x437   :  { %v799_v9 = vmul.f32 %v1504_v2, %v798_v4  ;;  %v769_v10 = vpop.xlane.xlu1 %768  ;;  %v681_v4 = vld [vmem:[%s2323_s9 + $0x10] sm:$0xff] }
 0x438   :  { %v783_v11 = vmul.f32 %v2024_v8, %v2024_v8  ;;  %v779_v12 = vmul.f32 0.001953125, %v769_v10  ;;  %v791_v1 = vsub.f32 %v1976_v37, %v2024_v8 }
 0x439   :  { %v800_v61 = vmul.f32 0.5, %v799_v9 }
 0x43a   :  { %v787_v21 = vsub.f32 %v779_v12, %v783_v11  ;;  %v685_v11 = vld [vmem:[%s2324_s10 + $0x10] sm:$0xff] }
 0x43b   :  { %v801_v16 = vsub.f32 1.5, %v800_v61 }
 0x43c   :  { %v1506_v13 = vpop.eup %1505  ;;  %v2037_v57 = vadd.f32 1e-05, %v787_v21 }
 0x43d   :  { %v802_v29 = vmul.f32 %v1504_v2, %v801_v16  ;;  %v808_v54 = vmul.f32 %v1506_v13, %v794_v3  ;;  %v727_v31 = vpop.xlane.xlu2 %726  ;;  %vm814_vm9 = vweird.f32 %v1506_v13 }
 0x43e   :  { %1507 = vrsqrt.f32 %v2037_v57  ;;  %v2044_v15 = vmul.f32 0.001953125, %v727_v31  ;;  %vm815_vm11 = vmor %vm813_vm10, %vm814_vm9  ;;  %vm823_vm13 = vweird.f32 %v2037_v57 }
 0x43f   :  { %v806_v35 = vsel %vm805_vm8, %v1504_v2, %v802_v29  ;;  %v809_v36 = vmul.f32 %v1506_v13, %v808_v54  ;;  %v772_v39 = vpop.xlane.xlu0 %771  ;;  %v682_v54 = vld [vmem:[%s2323_s9 + $0x18] sm:$0xff] }
 0x440   :  { %v837_v41 = vmul.f32 %v806_v35, %v789_v32  ;;  %v784_v40 = vmul.f32 %v2044_v15, %v2044_v15  ;;  %v780_v14 = vmul.f32 0.001953125, %v772_v39  ;;  %v792_v16 = vsub.f32 %v1978_v56, %v2044_v15  ;;  %v686_v56 = vld [vmem:[%s2324_s10 + $0x18] sm:$0xff] }
 0x441   :  { %v810_v20 = vmul.f32 0.5, %v809_v36 }
 0x442   :  { %v841_v45 = vmul.f32 %v837_v41, %v679_v17  ;;  %v788_v25 = vsub.f32 %v780_v14, %v784_v40 }
 0x443   :  { %v811_v18 = vsub.f32 1.5, %v810_v20 }
 0x444   :  { %v1508_v7 = vpop.eup %1507  ;;  %v2063_v23 = vadd.f32 %v841_v45, %v683_v44  ;;  %v796_v27 = vadd.f32 1e-05, %v788_v25 }
 0x445   :  { %v812_v24 = vmul.f32 %v1506_v13, %v811_v18  ;;  %v818_v48 = vmul.f32 %v1508_v7, %v2037_v57  ;;  %vm824_vm12 = vweird.f32 %v1508_v7 }
 0x446   :  { %v2070_v50 = vmul.f32 0.70710677, %v2063_v23  ;;  %1509 = vrsqrt.f32 %v796_v27  ;;  %vm825_vm14 = vmor %vm823_vm13, %vm824_vm12  ;;  %vm833_vm2 = vweird.f32 %v796_v27 }
 0x447   :  { %v816_v55 = vsel %vm815_vm11, %v1506_v13, %v812_v24  ;;  %v819_v58 = vmul.f32 %v1508_v7, %v818_v48 }
 0x448   :  { %v2078_v59 = vand.u32 2147483647, %v2070_v50  ;;  %v838_v60 = vmul.f32 %v816_v55, %v790_v52 }
 0x449   :  { %v820_v30 = vmul.f32 0.5, %v819_v58 }
 0x44a   :  { %v861_v38 = vmul.f32 0.3275911, %v2078_v59  ;;  %v842_v51 = vmul.f32 %v838_v60, %v680_v34  ;;  %v965_v20 = vsub.f32 0.0, %v2078_v59 }
 0x44b   :  { %v821_v63 = vsub.f32 1.5, %v820_v30 }
 0x44c   :  { %v1510_v0 = vpop.eup %1509  ;;  %v865_v49 = vadd.f32 1.0, %v861_v38  ;;  %v2084_v42 = vadd.f32 %v842_v51, %v684_v62  ;;  %v969_v24 = vmul.f32 %v965_v20, %v2078_v59 }
 0x44d   :  { %v822_v53 = vmul.f32 %v1508_v7, %v821_v63  ;;  %v828_v46 = vmul.f32 %v1510_v0, %v796_v27  ;;  %vm834_vm15 = vweird.f32 %v1510_v0 }
 0x44e   :  { %1511 = vrcp.f32 %v865_v49  ;;  %v2093_v9 = vmul.f32 0.70710677, %v2084_v42  ;;  %vm835_vm3 = vmor %vm833_vm2, %vm834_vm15  ;;  %v880_v32 = vand.u32 2147483648, %v865_v49  ;;  %v878_v17 = vand.u32 2147483647, %v865_v49 }
 0x44f   :  { %v826_v2 = vsel %vm825_vm14, %v1508_v7, %v822_v53  ;;  %v829_v3 = vmul.f32 %v1510_v0, %v828_v46  ;;  %vm874_vm5 = vweird.f32 %v865_v49  ;;  %v973_v51 = vmul.f32 1.442695, %v969_v24 }
 0x450   :  { %v839_v5 = vmul.f32 %v826_v2, %v791_v1  ;;  %v2099_v12 = vand.u32 2147483647, %v2093_v9  ;;  %v881_v41 = vor.u32 1.1754944e-38, %v880_v32  ;;  %vm879_vm7 = vcmp.eq.f32.partialorder %v878_v17, 8.507059e+37 }
 0x451   :  { %v830_v10 = vmul.f32 0.5, %v829_v3 }
 0x452   :  { %v843_v37 = vmul.f32 %v839_v5, %v681_v4  ;;  %v862_v19 = vmul.f32 0.3275911, %v2099_v12  ;;  %v966_v46 = vsub.f32 0.0, %v2099_v12 }
 0x453   :  { %v831_v8 = vsub.f32 1.5, %v830_v10 }
 0x454   :  { %v1512_v6 = vpop.eup %1511  ;;  %v2102_v61 = vadd.f32 %v843_v37, %v685_v11  ;;  %v866_v13 = vadd.f32 1.0, %v862_v19 }
 0x455   :  { %v870_v21 = vmul.f32 %v1512_v6, %v865_v49  ;;  %v832_v26 = vmul.f32 %v1510_v0, %v831_v8  ;;  %vm875_vm4 = vweird.f32 %v1512_v6  ;;  %v970_v8 = vmul.f32 %v966_v46, %v2099_v12 }
 0x456   :  { %v2107_v57 = vmul.f32 0.70710677, %v2102_v61  ;;  %1513 = vrcp.f32 %v866_v13  ;;  %vm876_vm6 = vmor %vm874_vm5, %vm875_vm4  ;;  %v893_v48 = vand.u32 2147483647, %v866_v13  ;;  %v895_v52 = vand.u32 2147483648, %v866_v13 }
 0x457   :  { %v871_v28 = vsub.f32 1.0, %v870_v21  ;;  %v836_v29 = vsel %vm835_vm3, %v1510_v0, %v832_v26  ;;  %vm889_vm9 = vweird.f32 %v866_v13  ;;  %v975_v17 = vmul.f32 1.442695, %v970_v8 }
 0x458   :  { %v840_v31 = vmul.f32 %v836_v29, %v792_v16  ;;  %v2113_v35 = vand.u32 2147483647, %v2107_v57  ;;  %v896_v63 = vor.u32 1.1754944e-38, %v895_v52  ;;  %vm894_vm11 = vcmp.eq.f32.partialorder %v893_v48, 8.507059e+37 }
 0x459   :  { %v872_v33 = vmul.f32 %v1512_v6, %v871_v28  ;;  %vm989_vm4 = vcmp.ge.f32.partialorder %v2070_v50, 0.0 }
 0x45a   :  { %v844_v15 = vmul.f32 %v840_v31, %v682_v54  ;;  %v863_v39 = vmul.f32 0.3275911, %v2113_v35 }
 0x45b   :  { %v873_v36 = vadd.f32 %v1512_v6, %v872_v33 }
 0x45c   :  { %v2119_v40 = vadd.f32 %v844_v15, %v686_v56  ;;  %v867_v43 = vadd.f32 1.0, %v863_v39  ;;  %v1514_v44 = vpop.eup %1513 }
 0x45d   :  { %v877_v14 = vsel %vm876_vm6, %v1512_v6, %v873_v36  ;;  %v885_v18 = vmul.f32 %v1514_v44, %v866_v13  ;;  %vm890_vm8 = vweird.f32 %v1514_v44  ;;  %v967_v13 = vsub.f32 0.0, %v2113_v35 }
 0x45e   :  { %v882_v45 = vsel %vm879_vm7, %v881_v41, %v877_v14  ;;  %v2123_v25 = vmul.f32 0.70710677, %v2119_v40  ;;  %1515 = vrcp.f32 %v867_v43  ;;  %vm891_vm10 = vmor %vm889_vm9, %vm890_vm8  ;;  %v910_v4 = vand.u32 2147483648, %v867_v43 }
 0x45f   :  { %v929_v22 = vmul.f32 1.0614054, %v882_v45  ;;  %v886_v27 = vsub.f32 1.0, %v885_v18  ;;  %v908_v10 = vand.u32 2147483647, %v867_v43  ;;  %vm904_vm13 = vweird.f32 %v867_v43 }
 0x460   :  { %v2126_v47 = vand.u32 2147483647, %v2123_v25  ;;  %v911_v16 = vor.u32 1.1754944e-38, %v910_v4  ;;  %v971_v39 = vmul.f32 %v967_v13, %v2113_v35  ;;  %vm990_vm7 = vcmp.ge.f32.partialorder %v2093_v9, 0.0 }
 0x461   :  { %v933_v7 = vadd.f32 -1.4531521, %v929_v22  ;;  %v887_v58 = vmul.f32 %v1514_v44, %v886_v27  ;;  %vm909_vm15 = vcmp.eq.f32.partialorder %v908_v10, 8.507059e+37  ;;  %vm991_vm8 = vcmp.ge.f32.partialorder %v2107_v57, 0.0 }
 0x462   :  { %v864_v34 = vmul.f32 0.3275911, %v2126_v47  ;;  %v977_v48 = vmul.f32 1.442695, %v971_v39  ;;  %vm992_vm9 = vcmp.ge.f32.partialorder %v2123_v25, 0.0  ;;  %v852_v39 = vmul.f32 0.5, %v2119_v40 }
 0x463   :  { %v937_v55 = vmul.f32 %v933_v7, %v882_v45  ;;  %v888_v62 = vadd.f32 %v1514_v44, %v887_v58 }
 0x464   :  { %v1516_v60 = vpop.eup %1515  ;;  %v2130_v38 = vadd.f32 1.0, %v864_v34 }
 0x465   :  { %v941_v30 = vadd.f32 1.4214138, %v937_v55  ;;  %v900_v0 = vmul.f32 %v1516_v60, %v867_v43  ;;  %v892_v53 = vsel %vm891_vm10, %v1514_v44, %v888_v62  ;;  %vm905_vm12 = vweird.f32 %v1516_v60 }
 0x466   :  { %1517 = vrcp.f32 %v2130_v38  ;;  %v897_v59 = vsel %vm894_vm11, %v896_v63, %v892_v53  ;;  %vm906_vm14 = vmor %vm904_vm13, %vm905_vm12  ;;  %v925_v41 = vand.u32 2147483648, %v2130_v38  ;;  %v923_v44 = vand.u32 2147483647, %v2130_v38 }
 0x467   :  { %v945_v49 = vmul.f32 %v941_v30, %v882_v45  ;;  %v901_v1 = vsub.f32 1.0, %v900_v0  ;;  %v930_v3 = vmul.f32 1.0614054, %v897_v59  ;;  %1519 = vpow2.f32 %v973_v51 }
 0x468   :  { %1521 = vpow2.f32 %v975_v17  ;;  %vm919_vm3 = vweird.f32 %v2130_v38  ;;  %v926_v35 = vor.u32 1.1754944e-38, %v925_v41  ;;  %vm924_vm6 = vcmp.eq.f32.partialorder %v923_v44, 8.507059e+37 }
 0x469   :  { %v949_v2 = vadd.f32 -0.28449672, %v945_v49  ;;  %v902_v5 = vmul.f32 %v1516_v60, %v901_v1  ;;  %v934_v37 = vadd.f32 -1.4531521, %v930_v3  ;;  %v849_v30 = vmul.f32 0.5, %v2063_v23 }
 0x46a   :  { %1523 = vpow2.f32 %v977_v48  ;;  %v1552_v48 = vld [vmem:[%s2315_s8 + $0x8] sm:$0xff] }
 0x46b   :  { %v953_v11 = vmul.f32 %v949_v2, %v882_v45  ;;  %v903_v6 = vadd.f32 %v1516_v60, %v902_v5  ;;  %v938_v26 = vmul.f32 %v934_v37, %v897_v59 }
 0x46c   :  { %v1518_v19 = vpop.eup %1517 }
 0x46d   :  { %v957_v21 = vadd.f32 0.2548296, %v953_v11  ;;  %v907_v28 = vsel %vm906_vm14, %v1516_v60, %v903_v6  ;;  %v915_v29 = vmul.f32 %v1518_v19, %v2130_v38  ;;  %v942_v31 = vadd.f32 1.4214138, %v938_v26  ;;  %v1520_v33 = vpop.eup %1519 }
 0x46e   :  { %v912_v32 = vsel %vm909_vm15, %v911_v16, %v907_v28  ;;  %vm920_vm2 = vweird.f32 %v1518_v19  ;;  %v968_v60 = vsub.f32 0.0, %v2126_v47  ;;  %v1522_v50 = vpop.eup %1521 }
 0x46f   :  { %v961_v54 = vmul.f32 %v957_v21, %v882_v45  ;;  %v931_v56 = vmul.f32 1.0614054, %v912_v32  ;;  %v916_v12 = vsub.f32 1.0, %v915_v29  ;;  %v946_v36 = vmul.f32 %v942_v31, %v897_v59  ;;  %vm921_vm5 = vmor %vm919_vm3, %vm920_vm2 }
 0x470   :  { %v972_v1 = vmul.f32 %v968_v60, %v2126_v47  ;;  %v1524_v8 = vpop.eup %1523 }
 0x471   :  { %v981_v15 = vmul.f32 %v1520_v33, %v961_v54  ;;  %v935_v14 = vadd.f32 -1.4531521, %v931_v56  ;;  %v917_v43 = vmul.f32 %v1518_v19, %v916_v12  ;;  %v950_v22 = vadd.f32 -0.28449672, %v946_v36 }
 0x472   :  { %v979_v11 = vmul.f32 1.442695, %v972_v1  ;;  %v851_v33 = vmul.f32 0.5, %v2102_v61  ;;  %v1478_v61 = vld [vmem:[%s2321_s12] ss:$0 sm:$0xff] }
 0x473   :  { %v985_v20 = vsub.f32 1.0, %v981_v15  ;;  %v939_v45 = vmul.f32 %v935_v14, %v912_v32  ;;  %v918_v18 = vadd.f32 %v1518_v19, %v917_v43  ;;  %v954_v27 = vmul.f32 %v950_v22, %v897_v59 }
 0x474   :  { %1525 = vpow2.f32 %v979_v11 }
 0x475   :  { %v993_v7 = vsub.f32 0.0, %v985_v20  ;;  %v943_v24 = vadd.f32 1.4214138, %v939_v45  ;;  %v922_v52 = vsel %vm921_vm5, %v1518_v19, %v918_v18  ;;  %v958_v58 = vadd.f32 0.2548296, %v954_v27 }
 0x476   :  { %v927_v34 = vsel %vm924_vm6, %v926_v35, %v922_v52  ;;  %v850_v19 = vmul.f32 0.5, %v2084_v42  ;;  %v1553_v52 = vld [vmem:[%s2315_s8 + $0x10] sm:$0xff] }
 0x477   :  { %v997_v55 = vsel %vm989_vm4, %v985_v20, %v993_v7  ;;  %v947_v51 = vmul.f32 %v943_v24, %v912_v32  ;;  %v932_v38 = vmul.f32 1.0614054, %v927_v34  ;;  %v962_v63 = vmul.f32 %v958_v58, %v897_v59  ;;  %v1551_v24 = vld [vmem:[%s2315_s8] sm:$0xff] }
 0x478   :  { %v1001_v62 = vadd.f32 1.0, %v997_v55  ;;  %v1554_v55 = vld [vmem:[%s2315_s8 + $0x18] sm:$0xff] }
 0x479   :  { %v951_v49 = vadd.f32 -0.28449672, %v947_v51  ;;  %v936_v53 = vadd.f32 -1.4531521, %v932_v38  ;;  %v982_v46 = vmul.f32 %v1522_v50, %v962_v63 }
 0x47a   :  { %v1005_v0 = vmul.f32 %v1001_v62, %v849_v30 }
 0x47b   :  { %v955_v2 = vmul.f32 %v951_v49, %v912_v32  ;;  %v940_v3 = vmul.f32 %v936_v53, %v927_v34  ;;  %v986_v4 = vsub.f32 1.0, %v982_v46 }
 0x47c   :  { %1460 = vmatmul.msk.f32.vlgmr.msra.gmra.mxu2 %vm157_vm1, %v1005_v0 }
 0x47d   :  { %v959_v5 = vadd.f32 0.2548296, %v955_v2  ;;  %v944_v10 = vadd.f32 1.4214138, %v940_v3  ;;  %v994_v23 = vsub.f32 0.0, %v986_v4 }
 0x47f   :  { %v963_v59 = vmul.f32 %v959_v5, %v912_v32  ;;  %v948_v37 = vmul.f32 %v944_v10, %v927_v34  ;;  %v998_v6 = vsel %vm990_vm7, %v986_v4, %v994_v23  ;;  %v1526_v32 = vpop.eup %1525 }
 0x480   :  { %v1002_v21 = vadd.f32 1.0, %v998_v6 }
 0x481   :  { %v983_v26 = vmul.f32 %v1524_v8, %v963_v59  ;;  %v952_v47 = vadd.f32 -0.28449672, %v948_v37 }
 0x482   :  { %v1006_v16 = vmul.f32 %v1002_v21, %v850_v19 }
 0x483   :  { %v987_v13 = vsub.f32 1.0, %v983_v26  ;;  %v956_v28 = vmul.f32 %v952_v47, %v927_v34 }
 0x484   :  { %1461 = vmatmul.msk.f32.gmra.mxu2 %vm157_vm1, %v1006_v16 }
 0x485   :  { %v995_v29 = vsub.f32 0.0, %v987_v13  ;;  %v960_v54 = vadd.f32 0.2548296, %v956_v28 }
 0x487   :  { %v999_v9 = vsel %vm991_vm8, %v987_v13, %v995_v29  ;;  %v964_v31 = vmul.f32 %v960_v54, %v927_v34 }
 0x488   :  { %v1003_v17 = vadd.f32 1.0, %v999_v9 }
 0x489   :  { %v984_v42 = vmul.f32 %v1526_v32, %v964_v31 }
 0x48a   :  { %v1007_v56 = vmul.f32 %v1003_v17, %v851_v33 }
 0x48b   :  { %v988_v12 = vsub.f32 1.0, %v984_v42 }
 0x48c   :  { %1462 = vmatmul.msk.f32.gmra.mxu2 %vm157_vm1, %v1007_v56  ;;  %v1062_v56 = vld [vmem:[%s2325_s13] sm:$0xff] }
 0x48d   :  { %v996_v15 = vsub.f32 0.0, %v988_v12 }
 0x48f   :  { %v1000_v36 = vsel %vm992_vm9, %v988_v12, %v996_v15 }
 0x490   :  { %v1004_v41 = vadd.f32 1.0, %v1000_v36 }
 0x492   :  { %v1008_v14 = vmul.f32 %v1004_v41, %v852_v39  ;;  %v1066_v41 = vld [vmem:[%s2326_s14] sm:$0xff] }
 0x494   :  { %1463 = vmatmul.msk.f32.gmra.mxu2 %vm157_vm1, %v1008_v14 }
 0x4ff   :  { %v1050_v57 = vpop.f32.mrf.mxu2 }
 0x500   :  { %v2167_v18 = vadd.f32 %v1478_v61, %v1050_v57 }
 0x502   :  { %v1111_v35 = vmul.f32 %v2167_v18, %v2167_v18 }
 0x507   :  { %v1053_v43 = vpop.f32.mrf.mxu2 }
 0x508   :  { %v2162_v25 = vadd.f32 %v1478_v61, %v1053_v43 }
 0x50a   :  { %v1112_v27 = vmul.f32 %v2162_v25, %v2162_v25 }
 0x50f   :  { %v1056_v44 = vpop.f32.mrf.mxu2 }
 0x510   :  { %v2158_v22 = vadd.f32 %v1478_v61, %v1056_v44 }
 0x512   :  { %v1113_v7 = vmul.f32 %v2158_v22, %v2158_v22 }
 0x517   :  { %v1059_v20 = vpop.f32.mrf.mxu2 }
 0x518   :  { %v2160_v45 = vadd.f32 %v1478_v61, %v1059_v20 }
 0x51a   :  { %v1114_v40 = vmul.f32 %v2160_v45, %v2160_v45  ;;  %1082 = vmatpush.msra.mxu3 %v2160_v45 }
 0x51c   :  { %1083 = vmatpush.msra.mxu3 %v2158_v22  ;;  %1127 = vmatpush.msrb.mxu0 %v1114_v40 }
 0x51e   :  { %1084 = vmatpush.msra.mxu3 %v2162_v25  ;;  %1128 = vmatpush.msrb.mxu0 %v1113_v7 }
 0x520   :  { %1085 = vmatpush.msra.mxu3 %v2167_v18  ;;  %1129 = vmatpush.msrb.mxu0 %v1112_v27 }
 0x521   :  { %1464 = vmatmul.msk.f32.vlgmr.msra.gmra.mxu3 %vm66_vm0, %v1551_v24 }
 0x522   :  { %1130 = vmatpush.msrb.mxu0 %v1111_v35 }
 0x523   :  { %1468 = vmatmul.msk.f32.vlgmr.msrb.gmra.mxu0 %vm66_vm0, %v1551_v24 }
 0x529   :  { %1465 = vmatmul.msk.f32.gmra.mxu3 %vm66_vm0, %v1552_v48 }
 0x52b   :  { %1469 = vmatmul.msk.f32.gmra.mxu0 %vm66_vm0, %v1552_v48 }
 0x531   :  { %1466 = vmatmul.msk.f32.gmra.mxu3 %vm66_vm0, %v1553_v52 }
 0x533   :  { %1470 = vmatmul.msk.f32.gmra.mxu0 %vm66_vm0, %v1553_v52 }
 0x539   :  { %1467 = vmatmul.msk.f32.gmra.mxu3 %vm66_vm0, %v1554_v55 }
 0x53b   :  { %1471 = vmatmul.msk.f32.gmra.mxu0 %vm66_vm0, %v1554_v55 }
 0x5a0   :  { %v1132_v58 = vpop.f32.mrf.mxu0 }
 0x5a1   :  { %v1144_v34 = vsel %vm66_vm0, %v1132_v58, 0.0 }
 0x5a2   :  { %1145 = vadd.xlane.f32.xlu2 %v1144_v34 }
 0x5a4   :  { %v1087_v60 = vpop.f32.mrf.mxu3 }
 0x5a5   :  { %v1099_v30 = vsel %vm66_vm0, %v1087_v60, 0.0 }
 0x5a6   :  { %1100 = vadd.xlane.f32.xlu1 %v1099_v30 }
 0x5a8   :  { %v1135_v62 = vpop.f32.mrf.mxu0 }
 0x5a9   :  { %v1147_v1 = vsel %vm66_vm0, %v1135_v62, 0.0 }
 0x5ac   :  { %v1090_v51 = vpop.f32.mrf.mxu3 }
 0x5ad   :  { %v1102_v38 = vsel %vm66_vm0, %v1090_v51, 0.0 }
 0x5ae   :  { %1103 = vadd.xlane.f32.xlu2 %v1102_v38 }
 0x5b0   :  { %v1138_v63 = vpop.f32.mrf.mxu0 }
 0x5b1   :  { %v1150_v3 = vsel %vm66_vm0, %v1138_v63, 0.0 }
 0x5b4   :  { %v1093_v50 = vpop.f32.mrf.mxu3 }
 0x5b5   :  { %v1105_v0 = vsel %vm66_vm0, %v1093_v50, 0.0 }
 0x5b6   :  { %1106 = vadd.xlane.f32.xlu0 %v1105_v0 }
 0x5b8   :  { %v1141_v49 = vpop.f32.mrf.mxu0 }
 0x5b9   :  { %v1153_v53 = vsel %vm66_vm0, %v1141_v49, 0.0 }
 0x5ba   :  { %1154 = vadd.xlane.f32.xlu2 %v1153_v53 }
 0x5bc   :  { %v1096_v46 = vpop.f32.mrf.mxu3 }
 0x5bd   :  { %v1108_v2 = vsel %vm66_vm0, %v1096_v46, 0.0 }
 0x5be   :  { %1148 = vadd.xlane.f32.xlu0 %v1147_v1  ;;  %1109 = vadd.xlane.f32.xlu1 %v1108_v2 }
 0x5c6   :  { %1151 = vadd.xlane.f32.xlu1 %v1150_v3 }
 0x615   :  { %v1146_v4 = vpop.xlane.xlu2 %1145 }
 0x616   :  { %v1160_v10 = vmul.f32 0.00390625, %v1146_v4  ;;  %v1063_v4 = vld [vmem:[%s2325_s13 + $0x8] sm:$0xff] }
 0x619   :  { %v1101_v5 = vpop.xlane.xlu1 %1100 }
 0x61a   :  { %v1156_v23 = vmul.f32 0.00390625, %v1101_v5 }
 0x61c   :  { %v1164_v11 = vmul.f32 %v1156_v23, %v1156_v23  ;;  %v1172_v29 = vsub.f32 %v2167_v18, %v1156_v23 }
 0x61e   :  { %v1168_v59 = vsub.f32 %v1160_v10, %v1164_v11 }
 0x620   :  { %v1176_v37 = vadd.f32 1e-05, %v1168_v59 }
 0x621   :  { %v1104_v8 = vpop.xlane.xlu2 %1103 }
 0x622   :  { %1527 = vrsqrt.f32 %v1176_v37  ;;  %v2206_v16 = vmul.f32 0.00390625, %v1104_v8  ;;  %vm1186_vm10 = vweird.f32 %v1176_v37  ;;  %v1065_v8 = vld [vmem:[%s2325_s13 + $0x18] sm:$0xff] }
 0x624   :  { %v1165_v32 = vmul.f32 %v2206_v16, %v2206_v16  ;;  %v1173_v1 = vsub.f32 %v2162_v25, %v2206_v16  ;;  %v1067_v25 = vld [vmem:[%s2326_s14 + $0x8] sm:$0xff] }
 0x628   :  { %v1528_v6 = vpop.eup %1527 }
 0x629   :  { %v1181_v19 = vmul.f32 %v1528_v6, %v1176_v37  ;;  %v1107_v21 = vpop.xlane.xlu0 %1106  ;;  %vm1187_vm1 = vweird.f32 %v1528_v6 }
 0x62a   :  { %vm1188_vm11 = vmor %vm1186_vm10, %vm1187_vm1  ;;  %v2217_v44 = vmul.f32 0.00390625, %v1107_v21 }
 0x62b   :  { %v1182_v26 = vmul.f32 %v1528_v6, %v1181_v19 }
 0x62c   :  { %v1166_v7 = vmul.f32 %v2217_v44, %v2217_v44 }
 0x62d   :  { %v1183_v47 = vmul.f32 0.5, %v1182_v26  ;;  %v1155_v28 = vpop.xlane.xlu2 %1154 }
 0x62e   :  { %v1163_v42 = vmul.f32 0.00390625, %v1155_v28 }
 0x62f   :  { %v1184_v13 = vsub.f32 1.5, %v1183_v47 }
 0x631   :  { %v1185_v54 = vmul.f32 %v1528_v6, %v1184_v13  ;;  %v1149_v9 = vpop.xlane.xlu0 %1148  ;;  %v1110_v31 = vpop.xlane.xlu1 %1109 }
 0x632   :  { %v1161_v33 = vmul.f32 0.00390625, %v1149_v9  ;;  %v1159_v17 = vmul.f32 0.00390625, %v1110_v31 }
 0x633   :  { %v1189_v12 = vsel %vm1188_vm11, %v1528_v6, %v1185_v54 }
 0x634   :  { %v1220_v15 = vmul.f32 %v1189_v12, %v1172_v29  ;;  %v1169_v36 = vsub.f32 %v1161_v33, %v1165_v32  ;;  %v1167_v39 = vmul.f32 %v1159_v17, %v1159_v17  ;;  %v1175_v11 = vsub.f32 %v2160_v45, %v1159_v17  ;;  %v1069_v45 = vld [vmem:[%s2326_s14 + $0x18] sm:$0xff] }
 0x636   :  { %v1224_v14 = vmul.f32 %v1220_v15, %v1062_v56  ;;  %v1177_v57 = vadd.f32 1e-05, %v1169_v36  ;;  %v1171_v43 = vsub.f32 %v1163_v42, %v1167_v39  ;;  %v1174_v15 = vsub.f32 %v2158_v22, %v2217_v44 }
 0x638   :  { %v2219_v61 = vadd.f32 %v1224_v14, %v1066_v41  ;;  %1529 = vrsqrt.f32 %v1177_v57  ;;  %v1179_v20 = vadd.f32 1e-05, %v1171_v43  ;;  %vm1196_vm13 = vweird.f32 %v1177_v57  ;;  %v1064_v14 = vld [vmem:[%s2325_s13 + $0x10] sm:$0xff] }
 0x639   :  { %v1152_v40 = vpop.xlane.xlu1 %1151 }
 0x63a   :  { %v2222_v18 = vmul.f32 0.70710677, %v2219_v61  ;;  %1531 = vrsqrt.f32 %v1179_v20  ;;  %v1162_v27 = vmul.f32 0.00390625, %v1152_v40  ;;  %vm1216_vm2 = vweird.f32 %v1179_v20 }
 0x63c   :  { %v2227_v35 = vand.u32 2147483647, %v2222_v18  ;;  %v1170_v24 = vsub.f32 %v1162_v27, %v1166_v7 }
 0x63e   :  { %v1530_v48 = vpop.eup %1529  ;;  %v1244_v52 = vmul.f32 0.3275911, %v2227_v35  ;;  %v1178_v58 = vadd.f32 1e-05, %v1170_v24  ;;  %v1348_v12 = vsub.f32 0.0, %v2227_v35 }
 0x63f   :  { %v1191_v55 = vmul.f32 %v1530_v48, %v1177_v57  ;;  %vm1197_vm12 = vweird.f32 %v1530_v48 }
 0x640   :  { %v1532_v34 = vpop.eup %1531  ;;  %v1248_v60 = vadd.f32 1.0, %v1244_v52  ;;  %1533 = vrsqrt.f32 %v1178_v58  ;;  %vm1198_vm15 = vmor %vm1196_vm13, %vm1197_vm12  ;;  %vm1206_vm9 = vweird.f32 %v1178_v58  ;;  %v1352_v22 = vmul.f32 %v1348_v12, %v2227_v35  ;;  %v1068_v52 = vld [vmem:[%s2326_s14 + $0x10] sm:$0xff] }
 0x641   :  { %v1192_v30 = vmul.f32 %v1530_v48, %v1191_v55  ;;  %v1211_v62 = vmul.f32 %v1532_v34, %v1179_v20  ;;  %vm1217_vm14 = vweird.f32 %v1532_v34 }
 0x642   :  { %1535 = vrcp.f32 %v1248_v60  ;;  %vm1218_vm3 = vmor %vm1216_vm2, %vm1217_vm14  ;;  %v1263_v19 = vand.u32 2147483648, %v1248_v60  ;;  %v1261_v13 = vand.u32 2147483647, %v1248_v60  ;;  %vm1257_vm5 = vweird.f32 %v1248_v60 }
 0x643   :  { %v1193_v51 = vmul.f32 0.5, %v1192_v30  ;;  %v1212_v38 = vmul.f32 %v1532_v34, %v1211_v62  ;;  %vm1372_vm2 = vcmp.ge.f32.partialorder %v2222_v18, 0.0 }
 0x644   :  { %v1264_v31 = vor.u32 1.1754944e-38, %v1263_v19  ;;  %vm1262_vm8 = vcmp.eq.f32.partialorder %v1261_v13, 8.507059e+37 }
 0x645   :  { %v1194_v63 = vsub.f32 1.5, %v1193_v51  ;;  %v1213_v50 = vmul.f32 0.5, %v1212_v38 }
 0x646   :  { %v1534_v0 = vpop.eup %1533 }
 0x647   :  { %v1195_v49 = vmul.f32 %v1530_v48, %v1194_v63  ;;  %v1214_v53 = vsub.f32 1.5, %v1213_v50  ;;  %v1201_v2 = vmul.f32 %v1534_v0, %v1178_v58  ;;  %vm1207_vm6 = vweird.f32 %v1534_v0 }
 0x648   :  { %v1536_v46 = vpop.eup %1535  ;;  %vm1208_vm1 = vmor %vm1206_vm9, %vm1207_vm6 }
 0x649   :  { %v1253_v3 = vmul.f32 %v1536_v46, %v1248_v60  ;;  %v1199_v5 = vsel %vm1198_vm15, %v1530_v48, %v1195_v49  ;;  %v1215_v10 = vmul.f32 %v1532_v34, %v1214_v53  ;;  %v1202_v59 = vmul.f32 %v1534_v0, %v1201_v2 }
 0x64a   :  { %v1221_v23 = vmul.f32 %v1199_v5, %v1173_v1  ;;  %vm1258_vm4 = vweird.f32 %v1536_v46 }
 0x64b   :  { %v1254_v37 = vsub.f32 1.0, %v1253_v3  ;;  %v1219_v6 = vsel %vm1218_vm3, %v1532_v34, %v1215_v10  ;;  %v1203_v47 = vmul.f32 0.5, %v1202_v59  ;;  %vm1259_vm7 = vmor %vm1257_vm5, %vm1258_vm4  ;;  %v1356_v34 = vmul.f32 1.442695, %v1352_v22 }
 0x64c   :  { %v1225_v21 = vmul.f32 %v1221_v23, %v1063_v4  ;;  %v1223_v26 = vmul.f32 %v1219_v6, %v1175_v11 }
 0x64d   :  { %v1255_v16 = vmul.f32 %v1536_v46, %v1254_v37  ;;  %v1204_v54 = vsub.f32 1.5, %v1203_v47 }
 0x64e   :  { %v2245_v28 = vadd.f32 %v1225_v21, %v1067_v25  ;;  %v1227_v29 = vmul.f32 %v1223_v26, %v1065_v8 }
 0x64f   :  { %v1256_v9 = vadd.f32 %v1536_v46, %v1255_v16  ;;  %v1205_v17 = vmul.f32 %v1534_v0, %v1204_v54  ;;  %v1232_v54 = vmul.f32 0.5, %v2219_v61 }
 0x650   :  { %v2248_v32 = vmul.f32 0.70710677, %v2245_v28  ;;  %v2250_v33 = vadd.f32 %v1227_v29, %v1069_v45 }
 0x651   :  { %v1260_v42 = vsel %vm1259_vm7, %v1536_v46, %v1256_v9  ;;  %v1209_v57 = vsel %vm1208_vm1, %v1534_v0, %v1205_v17 }
 0x652   :  { %v1265_v56 = vsel %vm1262_vm8, %v1264_v31, %v1260_v42  ;;  %v2256_v36 = vand.u32 2147483647, %v2248_v32  ;;  %v2259_v41 = vmul.f32 0.70710677, %v2250_v33  ;;  %v1222_v20 = vmul.f32 %v1209_v57, %v1174_v15 }
 0x653   :  { %v1312_v39 = vmul.f32 1.0614054, %v1265_v56  ;;  %vm1373_vm9 = vcmp.ge.f32.partialorder %v2248_v32, 0.0  ;;  %v1235_v32 = vmul.f32 0.5, %v2250_v33 }
 0x654   :  { %v1245_v43 = vmul.f32 0.3275911, %v2256_v36  ;;  %v2266_v7 = vand.u32 2147483647, %v2259_v41  ;;  %v1226_v27 = vmul.f32 %v1222_v20, %v1064_v14  ;;  %v1349_v16 = vsub.f32 0.0, %v2256_v36 }
 0x655   :  { %v1316_v40 = vadd.f32 -1.4531521, %v1312_v39  ;;  %vm1375_vm1 = vcmp.ge.f32.partialorder %v2259_v41, 0.0 }
 0x656   :  { %v1249_v44 = vadd.f32 1.0, %v1245_v43  ;;  %v1247_v48 = vmul.f32 0.3275911, %v2266_v7  ;;  %v2273_v60 = vadd.f32 %v1226_v27, %v1068_v52  ;;  %v1353_v15 = vmul.f32 %v1349_v16, %v2256_v36 }
 0x657   :  { %v1320_v24 = vmul.f32 %v1316_v40, %v1265_v56  ;;  %v1351_v14 = vsub.f32 0.0, %v2266_v7 }
 0x658   :  { %1537 = vrcp.f32 %v1249_v44  ;;  %v1251_v58 = vadd.f32 1.0, %v1247_v48  ;;  %v2276_v35 = vmul.f32 0.70710677, %v2273_v60  ;;  %v1276_v0 = vand.u32 2147483647, %v1249_v44 }
 0x659   :  { %v1324_v55 = vadd.f32 1.4214138, %v1320_v24  ;;  %v1278_v2 = vand.u32 2147483648, %v1249_v44  ;;  %vm1272_vm11 = vweird.f32 %v1249_v44  ;;  %v1355_v27 = vmul.f32 %v1351_v14, %v2266_v7 }
 0x65a   :  { %1539 = vrcp.f32 %v1251_v58  ;;  %v2279_v50 = vand.u32 2147483647, %v2276_v35  ;;  %vm1277_vm12 = vcmp.eq.f32.partialorder %v1276_v0, 8.507059e+37  ;;  %v1306_v8 = vand.u32 2147483647, %v1251_v58 }
 0x65b   :  { %v1328_v30 = vmul.f32 %v1324_v55, %v1265_v56  ;;  %1541 = vpow2.f32 %v1356_v34  ;;  %v1279_v25 = vor.u32 1.1754944e-38, %v1278_v2  ;;  %v1308_v6 = vand.u32 2147483648, %v1251_v58 }
 0x65c   :  { %v1246_v46 = vmul.f32 0.3275911, %v2279_v50  ;;  %vm1302_vm15 = vweird.f32 %v1251_v58  ;;  %vm1307_vm4 = vcmp.eq.f32.partialorder %v1306_v8, 8.507059e+37  ;;  %v1350_v7 = vsub.f32 0.0, %v2279_v50 }
 0x65d   :  { %v1332_v62 = vadd.f32 -0.28449672, %v1328_v30  ;;  %v1309_v9 = vor.u32 1.1754944e-38, %v1308_v6 }
 0x65e   :  { %v1538_v51 = vpop.eup %1537  ;;  %v1250_v23 = vadd.f32 1.0, %v1246_v46 }
 0x65f   :  { %v1336_v38 = vmul.f32 %v1332_v62, %v1265_v56  ;;  %v1268_v63 = vmul.f32 %v1538_v51, %v1249_v44  ;;  %vm1273_vm10 = vweird.f32 %v1538_v51  ;;  %v1358_v44 = vmul.f32 1.442695, %v1353_v15 }
 0x660   :  { %v1540_v1 = vpop.eup %1539  ;;  %vm1274_vm13 = vmor %vm1272_vm11, %vm1273_vm10  ;;  %1543 = vrcp.f32 %v1250_v23  ;;  %v1291_v24 = vand.u32 2147483647, %v1250_v23  ;;  %v1293_v36 = vand.u32 2147483648, %v1250_v23  ;;  %vm1287_vm6 = vweird.f32 %v1250_v23 }
 0x661   :  { %v1340_v49 = vadd.f32 0.2548296, %v1336_v38  ;;  %v1269_v53 = vsub.f32 1.0, %v1268_v63  ;;  %v1298_v5 = vmul.f32 %v1540_v1, %v1251_v58  ;;  %v1542_v10 = vpop.eup %1541  ;;  %vm1303_vm14 = vweird.f32 %v1540_v1 }
 0x662   :  { %vm1304_vm3 = vmor %vm1302_vm15, %vm1303_vm14  ;;  %1545 = vpow2.f32 %v1358_v44  ;;  %v1362_v62 = vmul.f32 1.442695, %v1355_v27  ;;  %vm1292_vm8 = vcmp.eq.f32.partialorder %v1291_v24, 8.507059e+37  ;;  %vm1374_vm10 = vcmp.ge.f32.partialorder %v2276_v35, 0.0 }
 0x663   :  { %v1344_v3 = vmul.f32 %v1340_v49, %v1265_v56  ;;  %v1270_v4 = vmul.f32 %v1538_v51, %v1269_v53  ;;  %v1299_v37 = vsub.f32 1.0, %v1298_v5 }
 0x664   :  { %1547 = vpow2.f32 %v1362_v62 }
 0x665   :  { %v1364_v11 = vmul.f32 %v1542_v10, %v1344_v3  ;;  %v1271_v59 = vadd.f32 %v1538_v51, %v1270_v4  ;;  %v1300_v26 = vmul.f32 %v1540_v1, %v1299_v37  ;;  %v1354_v10 = vmul.f32 %v1350_v7, %v2279_v50 }
 0x666   :  { %v1544_v56 = vpop.eup %1543 }
 0x667   :  { %v1368_v19 = vsub.f32 1.0, %v1364_v11  ;;  %v1275_v21 = vsel %vm1274_vm13, %v1538_v51, %v1271_v59  ;;  %v1301_v29 = vadd.f32 %v1540_v1, %v1300_v26  ;;  %v1283_v20 = vmul.f32 %v1544_v56, %v1250_v23 }
 0x668   :  { %v1280_v47 = vsel %vm1277_vm12, %v1279_v25, %v1275_v21  ;;  %vm1288_vm5 = vweird.f32 %v1544_v56  ;;  %v1294_v51 = vor.u32 1.1754944e-38, %v1293_v36  ;;  %v1546_v5 = vpop.eup %1545 }
 0x669   :  { %v1376_v13 = vsub.f32 0.0, %v1368_v19  ;;  %v1313_v45 = vmul.f32 1.0614054, %v1280_v47  ;;  %v1305_v42 = vsel %vm1304_vm3, %v1540_v1, %v1301_v29  ;;  %v1284_v18 = vsub.f32 1.0, %v1283_v20  ;;  %vm1289_vm7 = vmor %vm1287_vm6, %vm1288_vm5 }
 0x66a   :  { %v1310_v39 = vsel %vm1307_vm4, %v1309_v9, %v1305_v42  ;;  %v1548_v6 = vpop.eup %1547  ;;  %v1233_v29 = vmul.f32 0.5, %v2245_v28 }
 0x66b   :  { %v1380_v31 = vsel %vm1372_vm2, %v1368_v19, %v1376_v13  ;;  %v1317_v17 = vadd.f32 -1.4531521, %v1313_v45  ;;  %v1315_v43 = vmul.f32 1.0614054, %v1310_v39  ;;  %v1285_v55 = vmul.f32 %v1544_v56, %v1284_v18 }
 0x66c   :  { %v1384_v12 = vadd.f32 1.0, %v1380_v31  ;;  %v1360_v19 = vmul.f32 1.442695, %v1354_v10 }
 0x66d   :  { %v1321_v57 = vmul.f32 %v1317_v17, %v1280_v47  ;;  %v1319_v22 = vadd.f32 -1.4531521, %v1315_v43  ;;  %v1286_v30 = vadd.f32 %v1544_v56, %v1285_v55  ;;  %v1234_v43 = vmul.f32 0.5, %v2273_v60 }
 0x66e   :  { %v1388_v40 = vmul.f32 %v1384_v12, %v1232_v54  ;;  %1549 = vpow2.f32 %v1360_v19 }
 0x66f   :  { %v1325_v61 = vadd.f32 1.4214138, %v1321_v57  ;;  %v1323_v52 = vmul.f32 %v1319_v22, %v1310_v39  ;;  %v1290_v0 = vsel %vm1289_vm7, %v1544_v56, %v1286_v30 }
 0x670   :  { %1392 = vst.msk [vmem:[%s2327_s15] sm:$0xff] %vm66_vm0, %v1388_v40  ;;  %v1295_v49 = vsel %vm1292_vm8, %v1294_v51, %v1290_v0 }
 0x671   :  { %v1329_v48 = vmul.f32 %v1325_v61, %v1280_v47  ;;  %v1327_v34 = vadd.f32 1.4214138, %v1323_v52  ;;  %v1314_v1 = vmul.f32 1.0614054, %v1295_v49 }
 0x673   :  { %v1333_v58 = vadd.f32 -0.28449672, %v1329_v48  ;;  %v1331_v63 = vmul.f32 %v1327_v34, %v1310_v39  ;;  %v1318_v4 = vadd.f32 -1.4531521, %v1314_v1 }
 0x674   :  { %v1550_v15 = vpop.eup %1549 }
 0x675   :  { %v1337_v38 = vmul.f32 %v1333_v58, %v1280_v47  ;;  %v1335_v46 = vadd.f32 -0.28449672, %v1331_v63  ;;  %v1322_v59 = vmul.f32 %v1318_v4, %v1295_v49 }
 0x677   :  { %v1341_v53 = vadd.f32 0.2548296, %v1337_v38  ;;  %v1339_v3 = vmul.f32 %v1335_v46, %v1310_v39  ;;  %v1326_v8 = vadd.f32 1.4214138, %v1322_v59 }
 0x679   :  { %v1345_v2 = vmul.f32 %v1341_v53, %v1280_v47  ;;  %v1343_v11 = vadd.f32 0.2548296, %v1339_v3  ;;  %v1330_v16 = vmul.f32 %v1326_v8, %v1295_v49 }
 0x67b   :  { %v1365_v23 = vmul.f32 %v1546_v5, %v1345_v2  ;;  %v1347_v25 = vmul.f32 %v1343_v11, %v1310_v39  ;;  %v1334_v45 = vadd.f32 -0.28449672, %v1330_v16 }
 0x67d   :  { %v1369_v37 = vsub.f32 1.0, %v1365_v23  ;;  %v1367_v26 = vmul.f32 %v1548_v6, %v1347_v25  ;;  %v1338_v9 = vmul.f32 %v1334_v45, %v1295_v49 }
 0x67f   :  { %v1377_v21 = vsub.f32 0.0, %v1369_v37  ;;  %v1371_v47 = vsub.f32 1.0, %v1367_v26  ;;  %v1342_v42 = vadd.f32 0.2548296, %v1338_v9 }
 0x681   :  { %v1381_v13 = vsel %vm1373_vm9, %v1369_v37, %v1377_v21  ;;  %v1379_v50 = vsub.f32 0.0, %v1371_v47  ;;  %v1346_v12 = vmul.f32 %v1342_v42, %v1295_v49 }
 0x682   :  { %v1385_v54 = vadd.f32 1.0, %v1381_v13 }
 0x683   :  { %v1383_v17 = vsel %vm1375_vm1, %v1371_v47, %v1379_v50  ;;  %v1366_v39 = vmul.f32 %v1550_v15, %v1346_v12 }
 0x684   :  { %v1389_v31 = vmul.f32 %v1385_v54, %v1233_v29  ;;  %v1387_v56 = vadd.f32 1.0, %v1383_v17 }
 0x685   :  { %v1370_v41 = vsub.f32 1.0, %v1366_v39 }
 0x686   :  { %1393 = vst.msk [vmem:[%s2327_s15 + $0x8] sm:$0xff] %vm66_vm0, %v1389_v31  ;;  %v1391_v28 = vmul.f32 %v1387_v56, %v1235_v32 }
 0x687   :  { %v1378_v14 = vsub.f32 0.0, %v1370_v41 }
 0x688   :  { %1395 = vst.msk [vmem:[%s2327_s15 + $0x18] sm:$0xff] %vm66_vm0, %v1391_v28 }
 0x689   :  { %v1382_v57 = vsel %vm1374_vm10, %v1370_v41, %v1378_v14 }
 0x68a   :  { %v1386_v20 = vadd.f32 1.0, %v1382_v57 }
 0x68c   :  { %v1390_v40 = vmul.f32 %v1386_v20, %v1234_v43 }
 0x68e   :  { %1394 = vst.msk [vmem:[%s2327_s15 + $0x10] sm:$0xff] %vm66_vm0, %v1390_v40 }

</bundles_post_ra>
